<compile_context>
chip_gen: v5e
topology: v5e:2x2
jax: 0.10.0
libtpu: 0.0.40
codegen_flags: <defaults>
</compile_context>

<pallas_src>
import functools

import jax
import jax.numpy as jnp
from jax import lax
from jax.experimental import pallas as pl
from jax.experimental.pallas import tpu as pltpu

# ---- synthetic config (config.emb_size, config.class_num, output_size, ...) ----
EMB_SIZE = 32          # config.emb_size
NUM_HEADS = 4
HEAD_DIM = EMB_SIZE // NUM_HEADS
FFN_SIZE = 64
NUM_LAYERS = 2
VOCAB = 50
SEQ = 8
BATCH = 2
OUTPUT_SIZE = 16       # output_size
CLASS_NUM = 4          # config.class_num  (width of var head)


def _layer_norm(x, g, b, eps=1e-5):
    mu = jnp.mean(x, axis=-1, keepdims=True)
    var = jnp.mean((x - mu) ** 2, axis=-1, keepdims=True)
    return (x - mu) * lax.rsqrt(var + eps) * g + b


# ----------------------------------------------------------------------------
# Single fused Pallas kernel: all encoder layers + CLS extraction + both heads.
# Layer parameters arrive stacked along a leading (NUM_LAYERS,) axis and are
# indexed with static ints inside an unrolled Python loop.
# ----------------------------------------------------------------------------
def ernie_fused_kernel(x_ref,
                       wq_ref, bq_ref, wk_ref, bk_ref, wv_ref, bv_ref,
                       wo_ref, bo_ref, ln1_g_ref, ln1_b_ref,
                       w1_ref, b1_ref, w2_ref, b2_ref,
                       ln2_g_ref, ln2_b_ref,
                       wh_ref, bh_ref,
                       out_ref, var_ref):
    x = x_ref[...].astype(jnp.float32)                         # (B*S, H)

    for l in range(NUM_LAYERS):                                # static unrolled
        # QKV over the whole batch slab; 1/sqrt(head_dim) already folded in wq/bq.
        q = jnp.dot(x, wq_ref[l], preferred_element_type=jnp.float32) + bq_ref[l]
        k = jnp.dot(x, wk_ref[l], preferred_element_type=jnp.float32) + bk_ref[l]
        v = jnp.dot(x, wv_ref[l], preferred_element_type=jnp.float32) + bv_ref[l]

        ctx_rows = []
        for b in range(BATCH):                                 # static per-batch
            rs = slice(b * SEQ, (b + 1) * SEQ)
            qb, kb, vb = q[rs], k[rs], v[rs]                   # (S, H) each
            head_ctx = []
            for h in range(NUM_HEADS):                         # static per-head
                cs = slice(h * HEAD_DIM, (h + 1) * HEAD_DIM)
                # q @ k^T via dot_general (contract last dims) -> no explicit .T
                s = lax.dot_general(qb[:, cs], kb[:, cs],
                                    (((1,), (1,)), ((), ())),
                                    preferred_element_type=jnp.float32)  # (S, S)
                s = s - jnp.max(s, axis=-1, keepdims=True)
                e = jnp.exp(s)
                p = e * pl.reciprocal(jnp.sum(e, axis=-1, keepdims=True),
                                      approx=True)
                head_ctx.append(jnp.dot(p, vb[:, cs],
                                        preferred_element_type=jnp.float32))
            ctx_rows.append(jnp.concatenate(head_ctx, axis=-1))   # (S, H)
        ctx = jnp.concatenate(ctx_rows, axis=0)                   # (B*S, H)

        # single output projection for all heads / all batch rows
        attn = jnp.dot(ctx, wo_ref[l], preferred_element_type=jnp.float32) + bo_ref[l]
        h1 = _layer_norm(x + attn, ln1_g_ref[l], ln1_b_ref[l])

        ff = jnp.dot(h1, w1_ref[l], preferred_element_type=jnp.float32) + b1_ref[l]
        # TODO(synk): torch nn.GELU default is the exact erf form; tanh approx is
        # kept here (synthetic backbone) because it is the known-good TPU lowering.
        ff = jax.nn.gelu(ff)
        ff = jnp.dot(ff, w2_ref[l], preferred_element_type=jnp.float32) + b2_ref[l]
        x = _layer_norm(h1 + ff, ln2_g_ref[l], ln2_b_ref[l])

    # CLS rows (row b*S of the flattened slab) + both heads fused in one matmul
    # against the concatenated (H, O+K) weight.
    cls = jnp.concatenate([x[b * SEQ:b * SEQ + 1, :] for b in range(BATCH)],
                          axis=0)                               # (B, H)
    heads = jnp.dot(cls, wh_ref[...], preferred_element_type=jnp.float32) + bh_ref[...]
    out_ref[...] = heads[:, :OUTPUT_SIZE].astype(out_ref.dtype)
    var_ref[...] = heads[:, OUTPUT_SIZE:].astype(var_ref.dtype)


def ernie_pallas(x_flat, p):
    inputs = [x_flat,
              p["wq"], p["bq"], p["wk"], p["bk"], p["wv"], p["bv"],
              p["wo"], p["bo"], p["ln1_g"], p["ln1_b"],
              p["w1"], p["b1"], p["w2"], p["b2"],
              p["ln2_g"], p["ln2_b"],
              p["w_heads"], p["b_heads"]]

    def full_spec(a):
        if a.ndim == 2:
            return pl.BlockSpec(a.shape, lambda i: (0, 0))
        return pl.BlockSpec(a.shape, lambda i: (0, 0, 0))

    return pl.pallas_call(
        ernie_fused_kernel,
        out_shape=(jax.ShapeDtypeStruct((BATCH, OUTPUT_SIZE), jnp.float32),
                   jax.ShapeDtypeStruct((BATCH, CLASS_NUM), jnp.float32)),
        grid=(1,),
        in_specs=[full_spec(a) for a in inputs],
        out_specs=(pl.BlockSpec((BATCH, OUTPUT_SIZE), lambda i: (0, 0)),
                   pl.BlockSpec((BATCH, CLASS_NUM), lambda i: (0, 0))),
        compiler_params=pltpu.CompilerParams(
            dimension_semantics=("arbitrary",)),
    )(*inputs)


# ----------------------------------------------------------------------------
# parameter init (weights pre-transposed to (in, out); attn scale folded in wq)
# ----------------------------------------------------------------------------
def init_params(key):
    def nrm(k, shape, scale=0.02):
        return scale * jax.random.normal(k, shape, dtype=jnp.float32)

    keys = jax.random.split(key, 4 + NUM_LAYERS)
    attn_scale = 1.0 / (HEAD_DIM ** 0.5)

    # output_layer / var_layer: stored PyTorch-style (out, in), fused + transposed
    # into a single (H, O+K) weight for the kernel.
    w_out = nrm(keys[2], (OUTPUT_SIZE, EMB_SIZE))
    b_out = jnp.zeros((OUTPUT_SIZE,), jnp.float32)
    w_var = nrm(keys[3], (CLASS_NUM, EMB_SIZE))
    b_var = jnp.zeros((CLASS_NUM,), jnp.float32)
    w_heads = jnp.concatenate([w_out.T, w_var.T], axis=1)       # (H, O+K)
    b_heads = jnp.concatenate([b_out, b_var])[None, :]          # (1, O+K)

    names = ["wq", "bq", "wk", "bk", "wv", "bv", "wo", "bo",
             "ln1_g", "ln1_b", "w1", "b1", "w2", "b2", "ln2_g", "ln2_b"]
    layers = {n: [] for n in names}
    for li in range(NUM_LAYERS):
        lk = jax.random.split(keys[4 + li], 6)
        layers["wq"].append(nrm(lk[0], (EMB_SIZE, EMB_SIZE)).T * attn_scale)
        layers["bq"].append(jnp.zeros((1, EMB_SIZE), jnp.float32) * attn_scale)
        layers["wk"].append(nrm(lk[1], (EMB_SIZE, EMB_SIZE)).T)
        layers["bk"].append(jnp.zeros((1, EMB_SIZE), jnp.float32))
        layers["wv"].append(nrm(lk[2], (EMB_SIZE, EMB_SIZE)).T)
        layers["bv"].append(jnp.zeros((1, EMB_SIZE), jnp.float32))
        layers["wo"].append(nrm(lk[3], (EMB_SIZE, EMB_SIZE)).T)
        layers["bo"].append(jnp.zeros((1, EMB_SIZE), jnp.float32))
        layers["ln1_g"].append(jnp.ones((1, EMB_SIZE), jnp.float32))
        layers["ln1_b"].append(jnp.zeros((1, EMB_SIZE), jnp.float32))
        layers["w1"].append(nrm(lk[4], (FFN_SIZE, EMB_SIZE)).T)   # (H, F)
        layers["b1"].append(jnp.zeros((1, FFN_SIZE), jnp.float32))
        layers["w2"].append(nrm(lk[5], (EMB_SIZE, FFN_SIZE)).T)   # (F, H)
        layers["b2"].append(jnp.zeros((1, EMB_SIZE), jnp.float32))
        layers["ln2_g"].append(jnp.ones((1, EMB_SIZE), jnp.float32))
        layers["ln2_b"].append(jnp.zeros((1, EMB_SIZE), jnp.float32))

    params = {k: jnp.stack(v) for k, v in layers.items()}        # leading (L,) axis
    params.update({
        "tok_emb": nrm(keys[0], (VOCAB, EMB_SIZE)),
        "pos_emb": nrm(keys[1], (SEQ, EMB_SIZE)),
        "w_heads": w_heads, "b_heads": b_heads,
    })
    return params


# ----------------------------------------------------------------------------
# full forward
# ----------------------------------------------------------------------------
@functools.partial(jax.jit, static_argnames=("detach",))
def ernie_forward(token_ids, params, detach=False):
    # embedding lookup + position embedding (glue, plain JAX)
    x = params["tok_emb"][token_ids] + params["pos_emb"][None, :, :]
    x_flat = x.reshape(BATCH * SEQ, EMB_SIZE)
    # detach only cuts gradients in the torch reference (identity in forward).
    # TODO(synk): split the fused kernel at the CLS boundary if autodiff with
    # detach=True is ever needed; pad_mask / targets are unused by the reference.
    del detach
    output, var = ernie_pallas(x_flat, params)
    return output, var


if __name__ == "__main__":
    key = jax.random.PRNGKey(0)
    pkey, dkey = jax.random.split(key)
    params = init_params(pkey)
    token_ids = jax.random.randint(dkey, (BATCH, SEQ), 0, VOCAB, dtype=jnp.int32)

    output, var = ernie_forward(token_ids, params, detach=False)
    jax.block_until_ready((output, var))

    assert output.shape == (BATCH, OUTPUT_SIZE), output.shape
    assert var.shape == (BATCH, CLASS_NUM), var.shape
    assert bool(jnp.all(jnp.isfinite(output))) and bool(jnp.all(jnp.isfinite(var)))
    # TODO(synk): original ernie_model is an external pretrained checkpoint;
    # backbone here is a synthetic 2-layer encoder with deterministic weights.
    print("KERNEL_OK")
</pallas_src>

<mosaic_0001>
module attributes {stable_mosaic.version = 11 : i64} {
  func.func @ernie_fused_kernel(%arg0: i32, %arg1: memref<16x32xf32, #tpu.memory_space<vmem>>, %arg2: memref<2x32x32xf32, #tpu.memory_space<vmem>>, %arg3: memref<2x1x32xf32, #tpu.memory_space<vmem>>, %arg4: memref<2x32x32xf32, #tpu.memory_space<vmem>>, %arg5: memref<2x1x32xf32, #tpu.memory_space<vmem>>, %arg6: memref<2x32x32xf32, #tpu.memory_space<vmem>>, %arg7: memref<2x1x32xf32, #tpu.memory_space<vmem>>, %arg8: memref<2x32x32xf32, #tpu.memory_space<vmem>>, %arg9: memref<2x1x32xf32, #tpu.memory_space<vmem>>, %arg10: memref<2x1x32xf32, #tpu.memory_space<vmem>>, %arg11: memref<2x1x32xf32, #tpu.memory_space<vmem>>, %arg12: memref<2x32x64xf32, #tpu.memory_space<vmem>>, %arg13: memref<2x1x64xf32, #tpu.memory_space<vmem>>, %arg14: memref<2x64x32xf32, #tpu.memory_space<vmem>>, %arg15: memref<2x1x32xf32, #tpu.memory_space<vmem>>, %arg16: memref<2x1x32xf32, #tpu.memory_space<vmem>>, %arg17: memref<2x1x32xf32, #tpu.memory_space<vmem>>, %arg18: memref<32x20xf32, #tpu.memory_space<vmem>>, %arg19: memref<1x20xf32, #tpu.memory_space<vmem>>, %arg20: memref<2x16xf32, #tpu.memory_space<vmem>>, %arg21: memref<2x4xf32, #tpu.memory_space<vmem>>) attributes {dimension_semantics = [#tpu.dimension_semantics<arbitrary>], iteration_bounds = array<i64: 1>, scalar_prefetch = 0 : i64, scratch_operands = 0 : i64, tpu.core_type = #tpu.core_type<tc>, window_params = [{pipeline_mode = #tpu.pipeline_mode<synchronous>, transform_indices = @transform_0, window_bounds = array<i64: 16, 32>}, {pipeline_mode = #tpu.pipeline_mode<synchronous>, transform_indices = @transform_1, window_bounds = array<i64: 2, 32, 32>}, {pipeline_mode = #tpu.pipeline_mode<synchronous>, transform_indices = @transform_2, window_bounds = array<i64: 2, 1, 32>}, {pipeline_mode = #tpu.pipeline_mode<synchronous>, transform_indices = @transform_3, window_bounds = array<i64: 2, 32, 32>}, {pipeline_mode = #tpu.pipeline_mode<synchronous>, transform_indices = @transform_4, window_bounds = array<i64: 2, 1, 32>}, {pipeline_mode = #tpu.pipeline_mode<synchronous>, transform_indices = @transform_5, window_bounds = array<i64: 2, 32, 32>}, {pipeline_mode = #tpu.pipeline_mode<synchronous>, transform_indices = @transform_6, window_bounds = array<i64: 2, 1, 32>}, {pipeline_mode = #tpu.pipeline_mode<synchronous>, transform_indices = @transform_7, window_bounds = array<i64: 2, 32, 32>}, {pipeline_mode = #tpu.pipeline_mode<synchronous>, transform_indices = @transform_8, window_bounds = array<i64: 2, 1, 32>}, {pipeline_mode = #tpu.pipeline_mode<synchronous>, transform_indices = @transform_9, window_bounds = array<i64: 2, 1, 32>}, {pipeline_mode = #tpu.pipeline_mode<synchronous>, transform_indices = @transform_10, window_bounds = array<i64: 2, 1, 32>}, {pipeline_mode = #tpu.pipeline_mode<synchronous>, transform_indices = @transform_11, window_bounds = array<i64: 2, 32, 64>}, {pipeline_mode = #tpu.pipeline_mode<synchronous>, transform_indices = @transform_12, window_bounds = array<i64: 2, 1, 64>}, {pipeline_mode = #tpu.pipeline_mode<synchronous>, transform_indices = @transform_13, window_bounds = array<i64: 2, 64, 32>}, {pipeline_mode = #tpu.pipeline_mode<synchronous>, transform_indices = @transform_14, window_bounds = array<i64: 2, 1, 32>}, {pipeline_mode = #tpu.pipeline_mode<synchronous>, transform_indices = @transform_15, window_bounds = array<i64: 2, 1, 32>}, {pipeline_mode = #tpu.pipeline_mode<synchronous>, transform_indices = @transform_16, window_bounds = array<i64: 2, 1, 32>}, {pipeline_mode = #tpu.pipeline_mode<synchronous>, transform_indices = @transform_17, window_bounds = array<i64: 32, 20>}, {pipeline_mode = #tpu.pipeline_mode<synchronous>, transform_indices = @transform_18, window_bounds = array<i64: 1, 20>}, {pipeline_mode = #tpu.pipeline_mode<synchronous>, transform_indices = @transform_19, window_bounds = array<i64: 2, 16>}, {pipeline_mode = #tpu.pipeline_mode<synchronous>, transform_indices = @transform_20, window_bounds = array<i64: 2, 4>}]} {
    %c0 = arith.constant 0 : index
    %c0_0 = arith.constant 0 : index
    %0 = vector.load %arg1[%c0, %c0_0] : memref<16x32xf32, #tpu.memory_space<vmem>>, vector<16x32xf32>
    %c0_1 = arith.constant 0 : index
    %c0_2 = arith.constant 0 : index
    %c0_3 = arith.constant 0 : index
    %1 = vector.load %arg2[%c0_1, %c0_2, %c0_3] : memref<2x32x32xf32, #tpu.memory_space<vmem>>, vector<1x32x32xf32>
    %2 = vector.shape_cast %1 : vector<1x32x32xf32> to vector<32x32xf32>
    %cst = arith.constant dense<0.000000e+00> : vector<16x32xf32>
    %3 = tpu.matmul %0, %2, %cst {dimension_numbers = #tpu.dot_dimension_numbers<[1], [0], [0], [1], [0, 0, 1, 1], [], []>} : vector<16x32xf32>, vector<32x32xf32>, vector<16x32xf32> -> vector<16x32xf32>
    %c0_4 = arith.constant 0 : index
    %c0_5 = arith.constant 0 : index
    %c0_6 = arith.constant 0 : index
    %4 = vector.load %arg3[%c0_4, %c0_5, %c0_6] : memref<2x1x32xf32, #tpu.memory_space<vmem>>, vector<1x1x32xf32>
    %5 = vector.shape_cast %4 : vector<1x1x32xf32> to vector<1x32xf32>
    %6 = vector.broadcast %5 : vector<1x32xf32> to vector<16x32xf32>
    %7 = arith.addf %3, %6 : vector<16x32xf32>
    %c0_7 = arith.constant 0 : index
    %c0_8 = arith.constant 0 : index
    %c0_9 = arith.constant 0 : index
    %8 = vector.load %arg4[%c0_7, %c0_8, %c0_9] : memref<2x32x32xf32, #tpu.memory_space<vmem>>, vector<1x32x32xf32>
    %9 = vector.shape_cast %8 : vector<1x32x32xf32> to vector<32x32xf32>
    %cst_10 = arith.constant dense<0.000000e+00> : vector<16x32xf32>
    %10 = tpu.matmul %0, %9, %cst_10 {dimension_numbers = #tpu.dot_dimension_numbers<[1], [0], [0], [1], [0, 0, 1, 1], [], []>} : vector<16x32xf32>, vector<32x32xf32>, vector<16x32xf32> -> vector<16x32xf32>
    %c0_11 = arith.constant 0 : index
    %c0_12 = arith.constant 0 : index
    %c0_13 = arith.constant 0 : index
    %11 = vector.load %arg5[%c0_11, %c0_12, %c0_13] : memref<2x1x32xf32, #tpu.memory_space<vmem>>, vector<1x1x32xf32>
    %12 = vector.shape_cast %11 : vector<1x1x32xf32> to vector<1x32xf32>
    %13 = vector.broadcast %12 : vector<1x32xf32> to vector<16x32xf32>
    %14 = arith.addf %10, %13 : vector<16x32xf32>
    %c0_14 = arith.constant 0 : index
    %c0_15 = arith.constant 0 : index
    %c0_16 = arith.constant 0 : index
    %15 = vector.load %arg6[%c0_14, %c0_15, %c0_16] : memref<2x32x32xf32, #tpu.memory_space<vmem>>, vector<1x32x32xf32>
    %16 = vector.shape_cast %15 : vector<1x32x32xf32> to vector<32x32xf32>
    %cst_17 = arith.constant dense<0.000000e+00> : vector<16x32xf32>
    %17 = tpu.matmul %0, %16, %cst_17 {dimension_numbers = #tpu.dot_dimension_numbers<[1], [0], [0], [1], [0, 0, 1, 1], [], []>} : vector<16x32xf32>, vector<32x32xf32>, vector<16x32xf32> -> vector<16x32xf32>
    %c0_18 = arith.constant 0 : index
    %c0_19 = arith.constant 0 : index
    %c0_20 = arith.constant 0 : index
    %18 = vector.load %arg7[%c0_18, %c0_19, %c0_20] : memref<2x1x32xf32, #tpu.memory_space<vmem>>, vector<1x1x32xf32>
    %19 = vector.shape_cast %18 : vector<1x1x32xf32> to vector<1x32xf32>
    %20 = vector.broadcast %19 : vector<1x32xf32> to vector<16x32xf32>
    %21 = arith.addf %17, %20 : vector<16x32xf32>
    %22 = vector.extract_strided_slice %7 {offsets = [0, 0], sizes = [8, 32], strides = [1, 1]} : vector<16x32xf32> to vector<8x32xf32>
    %23 = vector.extract_strided_slice %14 {offsets = [0, 0], sizes = [8, 32], strides = [1, 1]} : vector<16x32xf32> to vector<8x32xf32>
    %24 = vector.extract_strided_slice %21 {offsets = [0, 0], sizes = [8, 32], strides = [1, 1]} : vector<16x32xf32> to vector<8x32xf32>
    %25 = vector.extract_strided_slice %22 {offsets = [0, 0], sizes = [8, 8], strides = [1, 1]} : vector<8x32xf32> to vector<8x8xf32>
    %26 = vector.extract_strided_slice %23 {offsets = [0, 0], sizes = [8, 8], strides = [1, 1]} : vector<8x32xf32> to vector<8x8xf32>
    %cst_21 = arith.constant dense<0.000000e+00> : vector<8x8xf32>
    %27 = tpu.matmul %25, %26, %cst_21 {dimension_numbers = #tpu.dot_dimension_numbers<[1], [1], [0], [0], [0, 0, 1, 0], [], []>} : vector<8x8xf32>, vector<8x8xf32>, vector<8x8xf32> -> vector<8x8xf32>
    %cst_22 = arith.constant dense<0xFF800000> : vector<8xf32>
    %28 = vector.multi_reduction <maximumf>, %27, %cst_22 [1] : vector<8x8xf32> to vector<8xf32>
    %29 = vector.shape_cast %28 : vector<8xf32> to vector<8x1xf32>
    %30 = vector.broadcast %29 : vector<8x1xf32> to vector<8x8xf32>
    %31 = arith.subf %27, %30 : vector<8x8xf32>
    %32 = math.exp %31 : vector<8x8xf32>
    %cst_23 = arith.constant dense<0.000000e+00> : vector<8xf32>
    %33 = vector.multi_reduction <add>, %32, %cst_23 [1] : vector<8x8xf32> to vector<8xf32>
    %34 = vector.shape_cast %33 : vector<8xf32> to vector<8x1xf32>
    %35 = tpu.reciprocal %34 {approx = true} : vector<8x1xf32> -> vector<8x1xf32>
    %36 = vector.broadcast %35 : vector<8x1xf32> to vector<8x8xf32>
    %37 = arith.mulf %32, %36 : vector<8x8xf32>
    %38 = vector.extract_strided_slice %24 {offsets = [0, 0], sizes = [8, 8], strides = [1, 1]} : vector<8x32xf32> to vector<8x8xf32>
    %cst_24 = arith.constant dense<0.000000e+00> : vector<8x8xf32>
    %39 = tpu.matmul %37, %38, %cst_24 {dimension_numbers = #tpu.dot_dimension_numbers<[1], [0], [0], [1], [0, 0, 1, 1], [], []>} : vector<8x8xf32>, vector<8x8xf32>, vector<8x8xf32> -> vector<8x8xf32>
    %40 = vector.extract_strided_slice %22 {offsets = [0, 8], sizes = [8, 8], strides = [1, 1]} : vector<8x32xf32> to vector<8x8xf32>
    %41 = vector.extract_strided_slice %23 {offsets = [0, 8], sizes = [8, 8], strides = [1, 1]} : vector<8x32xf32> to vector<8x8xf32>
    %cst_25 = arith.constant dense<0.000000e+00> : vector<8x8xf32>
    %42 = tpu.matmul %40, %41, %cst_25 {dimension_numbers = #tpu.dot_dimension_numbers<[1], [1], [0], [0], [0, 0, 1, 0], [], []>} : vector<8x8xf32>, vector<8x8xf32>, vector<8x8xf32> -> vector<8x8xf32>
    %cst_26 = arith.constant dense<0xFF800000> : vector<8xf32>
    %43 = vector.multi_reduction <maximumf>, %42, %cst_26 [1] : vector<8x8xf32> to vector<8xf32>
    %44 = vector.shape_cast %43 : vector<8xf32> to vector<8x1xf32>
    %45 = vector.broadcast %44 : vector<8x1xf32> to vector<8x8xf32>
    %46 = arith.subf %42, %45 : vector<8x8xf32>
    %47 = math.exp %46 : vector<8x8xf32>
    %cst_27 = arith.constant dense<0.000000e+00> : vector<8xf32>
    %48 = vector.multi_reduction <add>, %47, %cst_27 [1] : vector<8x8xf32> to vector<8xf32>
    %49 = vector.shape_cast %48 : vector<8xf32> to vector<8x1xf32>
    %50 = tpu.reciprocal %49 {approx = true} : vector<8x1xf32> -> vector<8x1xf32>
    %51 = vector.broadcast %50 : vector<8x1xf32> to vector<8x8xf32>
    %52 = arith.mulf %47, %51 : vector<8x8xf32>
    %53 = vector.extract_strided_slice %24 {offsets = [0, 8], sizes = [8, 8], strides = [1, 1]} : vector<8x32xf32> to vector<8x8xf32>
    %cst_28 = arith.constant dense<0.000000e+00> : vector<8x8xf32>
    %54 = tpu.matmul %52, %53, %cst_28 {dimension_numbers = #tpu.dot_dimension_numbers<[1], [0], [0], [1], [0, 0, 1, 1], [], []>} : vector<8x8xf32>, vector<8x8xf32>, vector<8x8xf32> -> vector<8x8xf32>
    %55 = vector.extract_strided_slice %22 {offsets = [0, 16], sizes = [8, 8], strides = [1, 1]} : vector<8x32xf32> to vector<8x8xf32>
    %56 = vector.extract_strided_slice %23 {offsets = [0, 16], sizes = [8, 8], strides = [1, 1]} : vector<8x32xf32> to vector<8x8xf32>
    %cst_29 = arith.constant dense<0.000000e+00> : vector<8x8xf32>
    %57 = tpu.matmul %55, %56, %cst_29 {dimension_numbers = #tpu.dot_dimension_numbers<[1], [1], [0], [0], [0, 0, 1, 0], [], []>} : vector<8x8xf32>, vector<8x8xf32>, vector<8x8xf32> -> vector<8x8xf32>
    %cst_30 = arith.constant dense<0xFF800000> : vector<8xf32>
    %58 = vector.multi_reduction <maximumf>, %57, %cst_30 [1] : vector<8x8xf32> to vector<8xf32>
    %59 = vector.shape_cast %58 : vector<8xf32> to vector<8x1xf32>
    %60 = vector.broadcast %59 : vector<8x1xf32> to vector<8x8xf32>
    %61 = arith.subf %57, %60 : vector<8x8xf32>
    %62 = math.exp %61 : vector<8x8xf32>
    %cst_31 = arith.constant dense<0.000000e+00> : vector<8xf32>
    %63 = vector.multi_reduction <add>, %62, %cst_31 [1] : vector<8x8xf32> to vector<8xf32>
    %64 = vector.shape_cast %63 : vector<8xf32> to vector<8x1xf32>
    %65 = tpu.reciprocal %64 {approx = true} : vector<8x1xf32> -> vector<8x1xf32>
    %66 = vector.broadcast %65 : vector<8x1xf32> to vector<8x8xf32>
    %67 = arith.mulf %62, %66 : vector<8x8xf32>
    %68 = vector.extract_strided_slice %24 {offsets = [0, 16], sizes = [8, 8], strides = [1, 1]} : vector<8x32xf32> to vector<8x8xf32>
    %cst_32 = arith.constant dense<0.000000e+00> : vector<8x8xf32>
    %69 = tpu.matmul %67, %68, %cst_32 {dimension_numbers = #tpu.dot_dimension_numbers<[1], [0], [0], [1], [0, 0, 1, 1], [], []>} : vector<8x8xf32>, vector<8x8xf32>, vector<8x8xf32> -> vector<8x8xf32>
    %70 = vector.extract_strided_slice %22 {offsets = [0, 24], sizes = [8, 8], strides = [1, 1]} : vector<8x32xf32> to vector<8x8xf32>
    %71 = vector.extract_strided_slice %23 {offsets = [0, 24], sizes = [8, 8], strides = [1, 1]} : vector<8x32xf32> to vector<8x8xf32>
    %cst_33 = arith.constant dense<0.000000e+00> : vector<8x8xf32>
    %72 = tpu.matmul %70, %71, %cst_33 {dimension_numbers = #tpu.dot_dimension_numbers<[1], [1], [0], [0], [0, 0, 1, 0], [], []>} : vector<8x8xf32>, vector<8x8xf32>, vector<8x8xf32> -> vector<8x8xf32>
    %cst_34 = arith.constant dense<0xFF800000> : vector<8xf32>
    %73 = vector.multi_reduction <maximumf>, %72, %cst_34 [1] : vector<8x8xf32> to vector<8xf32>
    %74 = vector.shape_cast %73 : vector<8xf32> to vector<8x1xf32>
    %75 = vector.broadcast %74 : vector<8x1xf32> to vector<8x8xf32>
    %76 = arith.subf %72, %75 : vector<8x8xf32>
    %77 = math.exp %76 : vector<8x8xf32>
    %cst_35 = arith.constant dense<0.000000e+00> : vector<8xf32>
    %78 = vector.multi_reduction <add>, %77, %cst_35 [1] : vector<8x8xf32> to vector<8xf32>
    %79 = vector.shape_cast %78 : vector<8xf32> to vector<8x1xf32>
    %80 = tpu.reciprocal %79 {approx = true} : vector<8x1xf32> -> vector<8x1xf32>
    %81 = vector.broadcast %80 : vector<8x1xf32> to vector<8x8xf32>
    %82 = arith.mulf %77, %81 : vector<8x8xf32>
    %83 = vector.extract_strided_slice %24 {offsets = [0, 24], sizes = [8, 8], strides = [1, 1]} : vector<8x32xf32> to vector<8x8xf32>
    %cst_36 = arith.constant dense<0.000000e+00> : vector<8x8xf32>
    %84 = tpu.matmul %82, %83, %cst_36 {dimension_numbers = #tpu.dot_dimension_numbers<[1], [0], [0], [1], [0, 0, 1, 1], [], []>} : vector<8x8xf32>, vector<8x8xf32>, vector<8x8xf32> -> vector<8x8xf32>
    %85 = tpu.concatenate %39, %54, %69, %84 in 1 : vector<8x8xf32>, vector<8x8xf32>, vector<8x8xf32>, vector<8x8xf32> -> vector<8x32xf32>
    %86 = vector.extract_strided_slice %7 {offsets = [8, 0], sizes = [8, 32], strides = [1, 1]} : vector<16x32xf32> to vector<8x32xf32>
    %87 = vector.extract_strided_slice %14 {offsets = [8, 0], sizes = [8, 32], strides = [1, 1]} : vector<16x32xf32> to vector<8x32xf32>
    %88 = vector.extract_strided_slice %21 {offsets = [8, 0], sizes = [8, 32], strides = [1, 1]} : vector<16x32xf32> to vector<8x32xf32>
    %89 = vector.extract_strided_slice %86 {offsets = [0, 0], sizes = [8, 8], strides = [1, 1]} : vector<8x32xf32> to vector<8x8xf32>
    %90 = vector.extract_strided_slice %87 {offsets = [0, 0], sizes = [8, 8], strides = [1, 1]} : vector<8x32xf32> to vector<8x8xf32>
    %cst_37 = arith.constant dense<0.000000e+00> : vector<8x8xf32>
    %91 = tpu.matmul %89, %90, %cst_37 {dimension_numbers = #tpu.dot_dimension_numbers<[1], [1], [0], [0], [0, 0, 1, 0], [], []>} : vector<8x8xf32>, vector<8x8xf32>, vector<8x8xf32> -> vector<8x8xf32>
    %cst_38 = arith.constant dense<0xFF800000> : vector<8xf32>
    %92 = vector.multi_reduction <maximumf>, %91, %cst_38 [1] : vector<8x8xf32> to vector<8xf32>
    %93 = vector.shape_cast %92 : vector<8xf32> to vector<8x1xf32>
    %94 = vector.broadcast %93 : vector<8x1xf32> to vector<8x8xf32>
    %95 = arith.subf %91, %94 : vector<8x8xf32>
    %96 = math.exp %95 : vector<8x8xf32>
    %cst_39 = arith.constant dense<0.000000e+00> : vector<8xf32>
    %97 = vector.multi_reduction <add>, %96, %cst_39 [1] : vector<8x8xf32> to vector<8xf32>
    %98 = vector.shape_cast %97 : vector<8xf32> to vector<8x1xf32>
    %99 = tpu.reciprocal %98 {approx = true} : vector<8x1xf32> -> vector<8x1xf32>
    %100 = vector.broadcast %99 : vector<8x1xf32> to vector<8x8xf32>
    %101 = arith.mulf %96, %100 : vector<8x8xf32>
    %102 = vector.extract_strided_slice %88 {offsets = [0, 0], sizes = [8, 8], strides = [1, 1]} : vector<8x32xf32> to vector<8x8xf32>
    %cst_40 = arith.constant dense<0.000000e+00> : vector<8x8xf32>
    %103 = tpu.matmul %101, %102, %cst_40 {dimension_numbers = #tpu.dot_dimension_numbers<[1], [0], [0], [1], [0, 0, 1, 1], [], []>} : vector<8x8xf32>, vector<8x8xf32>, vector<8x8xf32> -> vector<8x8xf32>
    %104 = vector.extract_strided_slice %86 {offsets = [0, 8], sizes = [8, 8], strides = [1, 1]} : vector<8x32xf32> to vector<8x8xf32>
    %105 = vector.extract_strided_slice %87 {offsets = [0, 8], sizes = [8, 8], strides = [1, 1]} : vector<8x32xf32> to vector<8x8xf32>
    %cst_41 = arith.constant dense<0.000000e+00> : vector<8x8xf32>
    %106 = tpu.matmul %104, %105, %cst_41 {dimension_numbers = #tpu.dot_dimension_numbers<[1], [1], [0], [0], [0, 0, 1, 0], [], []>} : vector<8x8xf32>, vector<8x8xf32>, vector<8x8xf32> -> vector<8x8xf32>
    %cst_42 = arith.constant dense<0xFF800000> : vector<8xf32>
    %107 = vector.multi_reduction <maximumf>, %106, %cst_42 [1] : vector<8x8xf32> to vector<8xf32>
    %108 = vector.shape_cast %107 : vector<8xf32> to vector<8x1xf32>
    %109 = vector.broadcast %108 : vector<8x1xf32> to vector<8x8xf32>
    %110 = arith.subf %106, %109 : vector<8x8xf32>
    %111 = math.exp %110 : vector<8x8xf32>
    %cst_43 = arith.constant dense<0.000000e+00> : vector<8xf32>
    %112 = vector.multi_reduction <add>, %111, %cst_43 [1] : vector<8x8xf32> to vector<8xf32>
    %113 = vector.shape_cast %112 : vector<8xf32> to vector<8x1xf32>
    %114 = tpu.reciprocal %113 {approx = true} : vector<8x1xf32> -> vector<8x1xf32>
    %115 = vector.broadcast %114 : vector<8x1xf32> to vector<8x8xf32>
    %116 = arith.mulf %111, %115 : vector<8x8xf32>
    %117 = vector.extract_strided_slice %88 {offsets = [0, 8], sizes = [8, 8], strides = [1, 1]} : vector<8x32xf32> to vector<8x8xf32>
    %cst_44 = arith.constant dense<0.000000e+00> : vector<8x8xf32>
    %118 = tpu.matmul %116, %117, %cst_44 {dimension_numbers = #tpu.dot_dimension_numbers<[1], [0], [0], [1], [0, 0, 1, 1], [], []>} : vector<8x8xf32>, vector<8x8xf32>, vector<8x8xf32> -> vector<8x8xf32>
    %119 = vector.extract_strided_slice %86 {offsets = [0, 16], sizes = [8, 8], strides = [1, 1]} : vector<8x32xf32> to vector<8x8xf32>
    %120 = vector.extract_strided_slice %87 {offsets = [0, 16], sizes = [8, 8], strides = [1, 1]} : vector<8x32xf32> to vector<8x8xf32>
    %cst_45 = arith.constant dense<0.000000e+00> : vector<8x8xf32>
    %121 = tpu.matmul %119, %120, %cst_45 {dimension_numbers = #tpu.dot_dimension_numbers<[1], [1], [0], [0], [0, 0, 1, 0], [], []>} : vector<8x8xf32>, vector<8x8xf32>, vector<8x8xf32> -> vector<8x8xf32>
    %cst_46 = arith.constant dense<0xFF800000> : vector<8xf32>
    %122 = vector.multi_reduction <maximumf>, %121, %cst_46 [1] : vector<8x8xf32> to vector<8xf32>
    %123 = vector.shape_cast %122 : vector<8xf32> to vector<8x1xf32>
    %124 = vector.broadcast %123 : vector<8x1xf32> to vector<8x8xf32>
    %125 = arith.subf %121, %124 : vector<8x8xf32>
    %126 = math.exp %125 : vector<8x8xf32>
    %cst_47 = arith.constant dense<0.000000e+00> : vector<8xf32>
    %127 = vector.multi_reduction <add>, %126, %cst_47 [1] : vector<8x8xf32> to vector<8xf32>
    %128 = vector.shape_cast %127 : vector<8xf32> to vector<8x1xf32>
    %129 = tpu.reciprocal %128 {approx = true} : vector<8x1xf32> -> vector<8x1xf32>
    %130 = vector.broadcast %129 : vector<8x1xf32> to vector<8x8xf32>
    %131 = arith.mulf %126, %130 : vector<8x8xf32>
    %132 = vector.extract_strided_slice %88 {offsets = [0, 16], sizes = [8, 8], strides = [1, 1]} : vector<8x32xf32> to vector<8x8xf32>
    %cst_48 = arith.constant dense<0.000000e+00> : vector<8x8xf32>
    %133 = tpu.matmul %131, %132, %cst_48 {dimension_numbers = #tpu.dot_dimension_numbers<[1], [0], [0], [1], [0, 0, 1, 1], [], []>} : vector<8x8xf32>, vector<8x8xf32>, vector<8x8xf32> -> vector<8x8xf32>
    %134 = vector.extract_strided_slice %86 {offsets = [0, 24], sizes = [8, 8], strides = [1, 1]} : vector<8x32xf32> to vector<8x8xf32>
    %135 = vector.extract_strided_slice %87 {offsets = [0, 24], sizes = [8, 8], strides = [1, 1]} : vector<8x32xf32> to vector<8x8xf32>
    %cst_49 = arith.constant dense<0.000000e+00> : vector<8x8xf32>
    %136 = tpu.matmul %134, %135, %cst_49 {dimension_numbers = #tpu.dot_dimension_numbers<[1], [1], [0], [0], [0, 0, 1, 0], [], []>} : vector<8x8xf32>, vector<8x8xf32>, vector<8x8xf32> -> vector<8x8xf32>
    %cst_50 = arith.constant dense<0xFF800000> : vector<8xf32>
    %137 = vector.multi_reduction <maximumf>, %136, %cst_50 [1] : vector<8x8xf32> to vector<8xf32>
    %138 = vector.shape_cast %137 : vector<8xf32> to vector<8x1xf32>
    %139 = vector.broadcast %138 : vector<8x1xf32> to vector<8x8xf32>
    %140 = arith.subf %136, %139 : vector<8x8xf32>
    %141 = math.exp %140 : vector<8x8xf32>
    %cst_51 = arith.constant dense<0.000000e+00> : vector<8xf32>
    %142 = vector.multi_reduction <add>, %141, %cst_51 [1] : vector<8x8xf32> to vector<8xf32>
    %143 = vector.shape_cast %142 : vector<8xf32> to vector<8x1xf32>
    %144 = tpu.reciprocal %143 {approx = true} : vector<8x1xf32> -> vector<8x1xf32>
    %145 = vector.broadcast %144 : vector<8x1xf32> to vector<8x8xf32>
    %146 = arith.mulf %141, %145 : vector<8x8xf32>
    %147 = vector.extract_strided_slice %88 {offsets = [0, 24], sizes = [8, 8], strides = [1, 1]} : vector<8x32xf32> to vector<8x8xf32>
    %cst_52 = arith.constant dense<0.000000e+00> : vector<8x8xf32>
    %148 = tpu.matmul %146, %147, %cst_52 {dimension_numbers = #tpu.dot_dimension_numbers<[1], [0], [0], [1], [0, 0, 1, 1], [], []>} : vector<8x8xf32>, vector<8x8xf32>, vector<8x8xf32> -> vector<8x8xf32>
    %149 = tpu.concatenate %103, %118, %133, %148 in 1 : vector<8x8xf32>, vector<8x8xf32>, vector<8x8xf32>, vector<8x8xf32> -> vector<8x32xf32>
    %150 = tpu.concatenate %85, %149 in 0 : vector<8x32xf32>, vector<8x32xf32> -> vector<16x32xf32>
    %c0_53 = arith.constant 0 : index
    %c0_54 = arith.constant 0 : index
    %c0_55 = arith.constant 0 : index
    %151 = vector.load %arg8[%c0_53, %c0_54, %c0_55] : memref<2x32x32xf32, #tpu.memory_space<vmem>>, vector<1x32x32xf32>
    %152 = vector.shape_cast %151 : vector<1x32x32xf32> to vector<32x32xf32>
    %cst_56 = arith.constant dense<0.000000e+00> : vector<16x32xf32>
    %153 = tpu.matmul %150, %152, %cst_56 {dimension_numbers = #tpu.dot_dimension_numbers<[1], [0], [0], [1], [0, 0, 1, 1], [], []>} : vector<16x32xf32>, vector<32x32xf32>, vector<16x32xf32> -> vector<16x32xf32>
    %c0_57 = arith.constant 0 : index
    %c0_58 = arith.constant 0 : index
    %c0_59 = arith.constant 0 : index
    %154 = vector.load %arg9[%c0_57, %c0_58, %c0_59] : memref<2x1x32xf32, #tpu.memory_space<vmem>>, vector<1x1x32xf32>
    %155 = vector.shape_cast %154 : vector<1x1x32xf32> to vector<1x32xf32>
    %156 = vector.broadcast %155 : vector<1x32xf32> to vector<16x32xf32>
    %157 = arith.addf %153, %156 : vector<16x32xf32>
    %158 = arith.addf %0, %157 : vector<16x32xf32>
    %c0_60 = arith.constant 0 : index
    %c0_61 = arith.constant 0 : index
    %c0_62 = arith.constant 0 : index
    %159 = vector.load %arg10[%c0_60, %c0_61, %c0_62] : memref<2x1x32xf32, #tpu.memory_space<vmem>>, vector<1x1x32xf32>
    %160 = vector.shape_cast %159 : vector<1x1x32xf32> to vector<1x32xf32>
    %c0_63 = arith.constant 0 : index
    %c0_64 = arith.constant 0 : index
    %c0_65 = arith.constant 0 : index
    %161 = vector.load %arg11[%c0_63, %c0_64, %c0_65] : memref<2x1x32xf32, #tpu.memory_space<vmem>>, vector<1x1x32xf32>
    %162 = vector.shape_cast %161 : vector<1x1x32xf32> to vector<1x32xf32>
    %cst_66 = arith.constant dense<0.000000e+00> : vector<16xf32>
    %163 = vector.multi_reduction <add>, %158, %cst_66 [1] : vector<16x32xf32> to vector<16xf32>
    %164 = vector.shape_cast %163 : vector<16xf32> to vector<16x1xf32>
    %cst_67 = arith.constant 3.200000e+01 : f32
    %165 = vector.broadcast %cst_67 : f32 to vector<16x1xf32>
    %166 = arith.divf %164, %165 : vector<16x1xf32>
    %167 = vector.broadcast %166 : vector<16x1xf32> to vector<16x32xf32>
    %168 = arith.subf %158, %167 : vector<16x32xf32>
    %169 = arith.mulf %168, %168 : vector<16x32xf32>
    %cst_68 = arith.constant dense<0.000000e+00> : vector<16xf32>
    %170 = vector.multi_reduction <add>, %169, %cst_68 [1] : vector<16x32xf32> to vector<16xf32>
    %171 = vector.shape_cast %170 : vector<16xf32> to vector<16x1xf32>
    %cst_69 = arith.constant 3.200000e+01 : f32
    %172 = vector.broadcast %cst_69 : f32 to vector<16x1xf32>
    %173 = arith.divf %171, %172 : vector<16x1xf32>
    %174 = vector.broadcast %166 : vector<16x1xf32> to vector<16x32xf32>
    %175 = arith.subf %158, %174 : vector<16x32xf32>
    %cst_70 = arith.constant 9.99999974E-6 : f32
    %176 = vector.broadcast %cst_70 : f32 to vector<16x1xf32>
    %177 = arith.addf %173, %176 : vector<16x1xf32>
    %178 = math.rsqrt %177 : vector<16x1xf32>
    %179 = vector.broadcast %178 : vector<16x1xf32> to vector<16x32xf32>
    %180 = arith.mulf %175, %179 : vector<16x32xf32>
    %181 = vector.broadcast %160 : vector<1x32xf32> to vector<16x32xf32>
    %182 = arith.mulf %180, %181 : vector<16x32xf32>
    %183 = vector.broadcast %162 : vector<1x32xf32> to vector<16x32xf32>
    %184 = arith.addf %182, %183 : vector<16x32xf32>
    %c0_71 = arith.constant 0 : index
    %c0_72 = arith.constant 0 : index
    %c0_73 = arith.constant 0 : index
    %185 = vector.load %arg12[%c0_71, %c0_72, %c0_73] : memref<2x32x64xf32, #tpu.memory_space<vmem>>, vector<1x32x64xf32>
    %186 = vector.shape_cast %185 : vector<1x32x64xf32> to vector<32x64xf32>
    %cst_74 = arith.constant dense<0.000000e+00> : vector<16x64xf32>
    %187 = tpu.matmul %184, %186, %cst_74 {dimension_numbers = #tpu.dot_dimension_numbers<[1], [0], [0], [1], [0, 0, 1, 1], [], []>} : vector<16x32xf32>, vector<32x64xf32>, vector<16x64xf32> -> vector<16x64xf32>
    %c0_75 = arith.constant 0 : index
    %c0_76 = arith.constant 0 : index
    %c0_77 = arith.constant 0 : index
    %188 = vector.load %arg13[%c0_75, %c0_76, %c0_77] : memref<2x1x64xf32, #tpu.memory_space<vmem>>, vector<1x1x64xf32>
    %189 = vector.shape_cast %188 : vector<1x1x64xf32> to vector<1x64xf32>
    %190 = vector.broadcast %189 : vector<1x64xf32> to vector<16x64xf32>
    %191 = arith.addf %187, %190 : vector<16x64xf32>
    %192 = arith.mulf %191, %191 : vector<16x64xf32>
    %193 = arith.mulf %191, %192 : vector<16x64xf32>
    %cst_78 = arith.constant 4.471500e-02 : f32
    %194 = vector.broadcast %cst_78 : f32 to vector<16x64xf32>
    %195 = arith.mulf %194, %193 : vector<16x64xf32>
    %196 = arith.addf %191, %195 : vector<16x64xf32>
    %cst_79 = arith.constant 0.797884583 : f32
    %197 = vector.broadcast %cst_79 : f32 to vector<16x64xf32>
    %198 = arith.mulf %197, %196 : vector<16x64xf32>
    %199 = math.tanh %198 : vector<16x64xf32>
    %cst_80 = arith.constant 1.000000e+00 : f32
    %200 = vector.broadcast %cst_80 : f32 to vector<16x64xf32>
    %201 = arith.addf %200, %199 : vector<16x64xf32>
    %cst_81 = arith.constant 5.000000e-01 : f32
    %202 = vector.broadcast %cst_81 : f32 to vector<16x64xf32>
    %203 = arith.mulf %202, %201 : vector<16x64xf32>
    %204 = arith.mulf %191, %203 : vector<16x64xf32>
    %c0_82 = arith.constant 0 : index
    %c0_83 = arith.constant 0 : index
    %c0_84 = arith.constant 0 : index
    %205 = vector.load %arg14[%c0_82, %c0_83, %c0_84] : memref<2x64x32xf32, #tpu.memory_space<vmem>>, vector<1x64x32xf32>
    %206 = vector.shape_cast %205 : vector<1x64x32xf32> to vector<64x32xf32>
    %cst_85 = arith.constant dense<0.000000e+00> : vector<16x32xf32>
    %207 = tpu.matmul %204, %206, %cst_85 {dimension_numbers = #tpu.dot_dimension_numbers<[1], [0], [0], [1], [0, 0, 1, 1], [], []>} : vector<16x64xf32>, vector<64x32xf32>, vector<16x32xf32> -> vector<16x32xf32>
    %c0_86 = arith.constant 0 : index
    %c0_87 = arith.constant 0 : index
    %c0_88 = arith.constant 0 : index
    %208 = vector.load %arg15[%c0_86, %c0_87, %c0_88] : memref<2x1x32xf32, #tpu.memory_space<vmem>>, vector<1x1x32xf32>
    %209 = vector.shape_cast %208 : vector<1x1x32xf32> to vector<1x32xf32>
    %210 = vector.broadcast %209 : vector<1x32xf32> to vector<16x32xf32>
    %211 = arith.addf %207, %210 : vector<16x32xf32>
    %212 = arith.addf %184, %211 : vector<16x32xf32>
    %c0_89 = arith.constant 0 : index
    %c0_90 = arith.constant 0 : index
    %c0_91 = arith.constant 0 : index
    %213 = vector.load %arg16[%c0_89, %c0_90, %c0_91] : memref<2x1x32xf32, #tpu.memory_space<vmem>>, vector<1x1x32xf32>
    %214 = vector.shape_cast %213 : vector<1x1x32xf32> to vector<1x32xf32>
    %c0_92 = arith.constant 0 : index
    %c0_93 = arith.constant 0 : index
    %c0_94 = arith.constant 0 : index
    %215 = vector.load %arg17[%c0_92, %c0_93, %c0_94] : memref<2x1x32xf32, #tpu.memory_space<vmem>>, vector<1x1x32xf32>
    %216 = vector.shape_cast %215 : vector<1x1x32xf32> to vector<1x32xf32>
    %cst_95 = arith.constant dense<0.000000e+00> : vector<16xf32>
    %217 = vector.multi_reduction <add>, %212, %cst_95 [1] : vector<16x32xf32> to vector<16xf32>
    %218 = vector.shape_cast %217 : vector<16xf32> to vector<16x1xf32>
    %cst_96 = arith.constant 3.200000e+01 : f32
    %219 = vector.broadcast %cst_96 : f32 to vector<16x1xf32>
    %220 = arith.divf %218, %219 : vector<16x1xf32>
    %221 = vector.broadcast %220 : vector<16x1xf32> to vector<16x32xf32>
    %222 = arith.subf %212, %221 : vector<16x32xf32>
    %223 = arith.mulf %222, %222 : vector<16x32xf32>
    %cst_97 = arith.constant dense<0.000000e+00> : vector<16xf32>
    %224 = vector.multi_reduction <add>, %223, %cst_97 [1] : vector<16x32xf32> to vector<16xf32>
    %225 = vector.shape_cast %224 : vector<16xf32> to vector<16x1xf32>
    %cst_98 = arith.constant 3.200000e+01 : f32
    %226 = vector.broadcast %cst_98 : f32 to vector<16x1xf32>
    %227 = arith.divf %225, %226 : vector<16x1xf32>
    %228 = vector.broadcast %220 : vector<16x1xf32> to vector<16x32xf32>
    %229 = arith.subf %212, %228 : vector<16x32xf32>
    %cst_99 = arith.constant 9.99999974E-6 : f32
    %230 = vector.broadcast %cst_99 : f32 to vector<16x1xf32>
    %231 = arith.addf %227, %230 : vector<16x1xf32>
    %232 = math.rsqrt %231 : vector<16x1xf32>
    %233 = vector.broadcast %232 : vector<16x1xf32> to vector<16x32xf32>
    %234 = arith.mulf %229, %233 : vector<16x32xf32>
    %235 = vector.broadcast %214 : vector<1x32xf32> to vector<16x32xf32>
    %236 = arith.mulf %234, %235 : vector<16x32xf32>
    %237 = vector.broadcast %216 : vector<1x32xf32> to vector<16x32xf32>
    %238 = arith.addf %236, %237 : vector<16x32xf32>
    %c1 = arith.constant 1 : index
    %c0_100 = arith.constant 0 : index
    %c0_101 = arith.constant 0 : index
    %239 = vector.load %arg2[%c1, %c0_100, %c0_101] : memref<2x32x32xf32, #tpu.memory_space<vmem>>, vector<1x32x32xf32>
    %240 = vector.shape_cast %239 : vector<1x32x32xf32> to vector<32x32xf32>
    %cst_102 = arith.constant dense<0.000000e+00> : vector<16x32xf32>
    %241 = tpu.matmul %238, %240, %cst_102 {dimension_numbers = #tpu.dot_dimension_numbers<[1], [0], [0], [1], [0, 0, 1, 1], [], []>} : vector<16x32xf32>, vector<32x32xf32>, vector<16x32xf32> -> vector<16x32xf32>
    %c1_103 = arith.constant 1 : index
    %c0_104 = arith.constant 0 : index
    %c0_105 = arith.constant 0 : index
    %242 = vector.load %arg3[%c1_103, %c0_104, %c0_105] : memref<2x1x32xf32, #tpu.memory_space<vmem>>, vector<1x1x32xf32>
    %243 = vector.shape_cast %242 : vector<1x1x32xf32> to vector<1x32xf32>
    %244 = vector.broadcast %243 : vector<1x32xf32> to vector<16x32xf32>
    %245 = arith.addf %241, %244 : vector<16x32xf32>
    %c1_106 = arith.constant 1 : index
    %c0_107 = arith.constant 0 : index
    %c0_108 = arith.constant 0 : index
    %246 = vector.load %arg4[%c1_106, %c0_107, %c0_108] : memref<2x32x32xf32, #tpu.memory_space<vmem>>, vector<1x32x32xf32>
    %247 = vector.shape_cast %246 : vector<1x32x32xf32> to vector<32x32xf32>
    %cst_109 = arith.constant dense<0.000000e+00> : vector<16x32xf32>
    %248 = tpu.matmul %238, %247, %cst_109 {dimension_numbers = #tpu.dot_dimension_numbers<[1], [0], [0], [1], [0, 0, 1, 1], [], []>} : vector<16x32xf32>, vector<32x32xf32>, vector<16x32xf32> -> vector<16x32xf32>
    %c1_110 = arith.constant 1 : index
    %c0_111 = arith.constant 0 : index
    %c0_112 = arith.constant 0 : index
    %249 = vector.load %arg5[%c1_110, %c0_111, %c0_112] : memref<2x1x32xf32, #tpu.memory_space<vmem>>, vector<1x1x32xf32>
    %250 = vector.shape_cast %249 : vector<1x1x32xf32> to vector<1x32xf32>
    %251 = vector.broadcast %250 : vector<1x32xf32> to vector<16x32xf32>
    %252 = arith.addf %248, %251 : vector<16x32xf32>
    %c1_113 = arith.constant 1 : index
    %c0_114 = arith.constant 0 : index
    %c0_115 = arith.constant 0 : index
    %253 = vector.load %arg6[%c1_113, %c0_114, %c0_115] : memref<2x32x32xf32, #tpu.memory_space<vmem>>, vector<1x32x32xf32>
    %254 = vector.shape_cast %253 : vector<1x32x32xf32> to vector<32x32xf32>
    %cst_116 = arith.constant dense<0.000000e+00> : vector<16x32xf32>
    %255 = tpu.matmul %238, %254, %cst_116 {dimension_numbers = #tpu.dot_dimension_numbers<[1], [0], [0], [1], [0, 0, 1, 1], [], []>} : vector<16x32xf32>, vector<32x32xf32>, vector<16x32xf32> -> vector<16x32xf32>
    %c1_117 = arith.constant 1 : index
    %c0_118 = arith.constant 0 : index
    %c0_119 = arith.constant 0 : index
    %256 = vector.load %arg7[%c1_117, %c0_118, %c0_119] : memref<2x1x32xf32, #tpu.memory_space<vmem>>, vector<1x1x32xf32>
    %257 = vector.shape_cast %256 : vector<1x1x32xf32> to vector<1x32xf32>
    %258 = vector.broadcast %257 : vector<1x32xf32> to vector<16x32xf32>
    %259 = arith.addf %255, %258 : vector<16x32xf32>
    %260 = vector.extract_strided_slice %245 {offsets = [0, 0], sizes = [8, 32], strides = [1, 1]} : vector<16x32xf32> to vector<8x32xf32>
    %261 = vector.extract_strided_slice %252 {offsets = [0, 0], sizes = [8, 32], strides = [1, 1]} : vector<16x32xf32> to vector<8x32xf32>
    %262 = vector.extract_strided_slice %259 {offsets = [0, 0], sizes = [8, 32], strides = [1, 1]} : vector<16x32xf32> to vector<8x32xf32>
    %263 = vector.extract_strided_slice %260 {offsets = [0, 0], sizes = [8, 8], strides = [1, 1]} : vector<8x32xf32> to vector<8x8xf32>
    %264 = vector.extract_strided_slice %261 {offsets = [0, 0], sizes = [8, 8], strides = [1, 1]} : vector<8x32xf32> to vector<8x8xf32>
    %cst_120 = arith.constant dense<0.000000e+00> : vector<8x8xf32>
    %265 = tpu.matmul %263, %264, %cst_120 {dimension_numbers = #tpu.dot_dimension_numbers<[1], [1], [0], [0], [0, 0, 1, 0], [], []>} : vector<8x8xf32>, vector<8x8xf32>, vector<8x8xf32> -> vector<8x8xf32>
    %cst_121 = arith.constant dense<0xFF800000> : vector<8xf32>
    %266 = vector.multi_reduction <maximumf>, %265, %cst_121 [1] : vector<8x8xf32> to vector<8xf32>
    %267 = vector.shape_cast %266 : vector<8xf32> to vector<8x1xf32>
    %268 = vector.broadcast %267 : vector<8x1xf32> to vector<8x8xf32>
    %269 = arith.subf %265, %268 : vector<8x8xf32>
    %270 = math.exp %269 : vector<8x8xf32>
    %cst_122 = arith.constant dense<0.000000e+00> : vector<8xf32>
    %271 = vector.multi_reduction <add>, %270, %cst_122 [1] : vector<8x8xf32> to vector<8xf32>
    %272 = vector.shape_cast %271 : vector<8xf32> to vector<8x1xf32>
    %273 = tpu.reciprocal %272 {approx = true} : vector<8x1xf32> -> vector<8x1xf32>
    %274 = vector.broadcast %273 : vector<8x1xf32> to vector<8x8xf32>
    %275 = arith.mulf %270, %274 : vector<8x8xf32>
    %276 = vector.extract_strided_slice %262 {offsets = [0, 0], sizes = [8, 8], strides = [1, 1]} : vector<8x32xf32> to vector<8x8xf32>
    %cst_123 = arith.constant dense<0.000000e+00> : vector<8x8xf32>
    %277 = tpu.matmul %275, %276, %cst_123 {dimension_numbers = #tpu.dot_dimension_numbers<[1], [0], [0], [1], [0, 0, 1, 1], [], []>} : vector<8x8xf32>, vector<8x8xf32>, vector<8x8xf32> -> vector<8x8xf32>
    %278 = vector.extract_strided_slice %260 {offsets = [0, 8], sizes = [8, 8], strides = [1, 1]} : vector<8x32xf32> to vector<8x8xf32>
    %279 = vector.extract_strided_slice %261 {offsets = [0, 8], sizes = [8, 8], strides = [1, 1]} : vector<8x32xf32> to vector<8x8xf32>
    %cst_124 = arith.constant dense<0.000000e+00> : vector<8x8xf32>
    %280 = tpu.matmul %278, %279, %cst_124 {dimension_numbers = #tpu.dot_dimension_numbers<[1], [1], [0], [0], [0, 0, 1, 0], [], []>} : vector<8x8xf32>, vector<8x8xf32>, vector<8x8xf32> -> vector<8x8xf32>
    %cst_125 = arith.constant dense<0xFF800000> : vector<8xf32>
    %281 = vector.multi_reduction <maximumf>, %280, %cst_125 [1] : vector<8x8xf32> to vector<8xf32>
    %282 = vector.shape_cast %281 : vector<8xf32> to vector<8x1xf32>
    %283 = vector.broadcast %282 : vector<8x1xf32> to vector<8x8xf32>
    %284 = arith.subf %280, %283 : vector<8x8xf32>
    %285 = math.exp %284 : vector<8x8xf32>
    %cst_126 = arith.constant dense<0.000000e+00> : vector<8xf32>
    %286 = vector.multi_reduction <add>, %285, %cst_126 [1] : vector<8x8xf32> to vector<8xf32>
    %287 = vector.shape_cast %286 : vector<8xf32> to vector<8x1xf32>
    %288 = tpu.reciprocal %287 {approx = true} : vector<8x1xf32> -> vector<8x1xf32>
    %289 = vector.broadcast %288 : vector<8x1xf32> to vector<8x8xf32>
    %290 = arith.mulf %285, %289 : vector<8x8xf32>
    %291 = vector.extract_strided_slice %262 {offsets = [0, 8], sizes = [8, 8], strides = [1, 1]} : vector<8x32xf32> to vector<8x8xf32>
    %cst_127 = arith.constant dense<0.000000e+00> : vector<8x8xf32>
    %292 = tpu.matmul %290, %291, %cst_127 {dimension_numbers = #tpu.dot_dimension_numbers<[1], [0], [0], [1], [0, 0, 1, 1], [], []>} : vector<8x8xf32>, vector<8x8xf32>, vector<8x8xf32> -> vector<8x8xf32>
    %293 = vector.extract_strided_slice %260 {offsets = [0, 16], sizes = [8, 8], strides = [1, 1]} : vector<8x32xf32> to vector<8x8xf32>
    %294 = vector.extract_strided_slice %261 {offsets = [0, 16], sizes = [8, 8], strides = [1, 1]} : vector<8x32xf32> to vector<8x8xf32>
    %cst_128 = arith.constant dense<0.000000e+00> : vector<8x8xf32>
    %295 = tpu.matmul %293, %294, %cst_128 {dimension_numbers = #tpu.dot_dimension_numbers<[1], [1], [0], [0], [0, 0, 1, 0], [], []>} : vector<8x8xf32>, vector<8x8xf32>, vector<8x8xf32> -> vector<8x8xf32>
    %cst_129 = arith.constant dense<0xFF800000> : vector<8xf32>
    %296 = vector.multi_reduction <maximumf>, %295, %cst_129 [1] : vector<8x8xf32> to vector<8xf32>
    %297 = vector.shape_cast %296 : vector<8xf32> to vector<8x1xf32>
    %298 = vector.broadcast %297 : vector<8x1xf32> to vector<8x8xf32>
    %299 = arith.subf %295, %298 : vector<8x8xf32>
    %300 = math.exp %299 : vector<8x8xf32>
    %cst_130 = arith.constant dense<0.000000e+00> : vector<8xf32>
    %301 = vector.multi_reduction <add>, %300, %cst_130 [1] : vector<8x8xf32> to vector<8xf32>
    %302 = vector.shape_cast %301 : vector<8xf32> to vector<8x1xf32>
    %303 = tpu.reciprocal %302 {approx = true} : vector<8x1xf32> -> vector<8x1xf32>
    %304 = vector.broadcast %303 : vector<8x1xf32> to vector<8x8xf32>
    %305 = arith.mulf %300, %304 : vector<8x8xf32>
    %306 = vector.extract_strided_slice %262 {offsets = [0, 16], sizes = [8, 8], strides = [1, 1]} : vector<8x32xf32> to vector<8x8xf32>
    %cst_131 = arith.constant dense<0.000000e+00> : vector<8x8xf32>
    %307 = tpu.matmul %305, %306, %cst_131 {dimension_numbers = #tpu.dot_dimension_numbers<[1], [0], [0], [1], [0, 0, 1, 1], [], []>} : vector<8x8xf32>, vector<8x8xf32>, vector<8x8xf32> -> vector<8x8xf32>
    %308 = vector.extract_strided_slice %260 {offsets = [0, 24], sizes = [8, 8], strides = [1, 1]} : vector<8x32xf32> to vector<8x8xf32>
    %309 = vector.extract_strided_slice %261 {offsets = [0, 24], sizes = [8, 8], strides = [1, 1]} : vector<8x32xf32> to vector<8x8xf32>
    %cst_132 = arith.constant dense<0.000000e+00> : vector<8x8xf32>
    %310 = tpu.matmul %308, %309, %cst_132 {dimension_numbers = #tpu.dot_dimension_numbers<[1], [1], [0], [0], [0, 0, 1, 0], [], []>} : vector<8x8xf32>, vector<8x8xf32>, vector<8x8xf32> -> vector<8x8xf32>
    %cst_133 = arith.constant dense<0xFF800000> : vector<8xf32>
    %311 = vector.multi_reduction <maximumf>, %310, %cst_133 [1] : vector<8x8xf32> to vector<8xf32>
    %312 = vector.shape_cast %311 : vector<8xf32> to vector<8x1xf32>
    %313 = vector.broadcast %312 : vector<8x1xf32> to vector<8x8xf32>
    %314 = arith.subf %310, %313 : vector<8x8xf32>
    %315 = math.exp %314 : vector<8x8xf32>
    %cst_134 = arith.constant dense<0.000000e+00> : vector<8xf32>
    %316 = vector.multi_reduction <add>, %315, %cst_134 [1] : vector<8x8xf32> to vector<8xf32>
    %317 = vector.shape_cast %316 : vector<8xf32> to vector<8x1xf32>
    %318 = tpu.reciprocal %317 {approx = true} : vector<8x1xf32> -> vector<8x1xf32>
    %319 = vector.broadcast %318 : vector<8x1xf32> to vector<8x8xf32>
    %320 = arith.mulf %315, %319 : vector<8x8xf32>
    %321 = vector.extract_strided_slice %262 {offsets = [0, 24], sizes = [8, 8], strides = [1, 1]} : vector<8x32xf32> to vector<8x8xf32>
    %cst_135 = arith.constant dense<0.000000e+00> : vector<8x8xf32>
    %322 = tpu.matmul %320, %321, %cst_135 {dimension_numbers = #tpu.dot_dimension_numbers<[1], [0], [0], [1], [0, 0, 1, 1], [], []>} : vector<8x8xf32>, vector<8x8xf32>, vector<8x8xf32> -> vector<8x8xf32>
    %323 = tpu.concatenate %277, %292, %307, %322 in 1 : vector<8x8xf32>, vector<8x8xf32>, vector<8x8xf32>, vector<8x8xf32> -> vector<8x32xf32>
    %324 = vector.extract_strided_slice %245 {offsets = [8, 0], sizes = [8, 32], strides = [1, 1]} : vector<16x32xf32> to vector<8x32xf32>
    %325 = vector.extract_strided_slice %252 {offsets = [8, 0], sizes = [8, 32], strides = [1, 1]} : vector<16x32xf32> to vector<8x32xf32>
    %326 = vector.extract_strided_slice %259 {offsets = [8, 0], sizes = [8, 32], strides = [1, 1]} : vector<16x32xf32> to vector<8x32xf32>
    %327 = vector.extract_strided_slice %324 {offsets = [0, 0], sizes = [8, 8], strides = [1, 1]} : vector<8x32xf32> to vector<8x8xf32>
    %328 = vector.extract_strided_slice %325 {offsets = [0, 0], sizes = [8, 8], strides = [1, 1]} : vector<8x32xf32> to vector<8x8xf32>
    %cst_136 = arith.constant dense<0.000000e+00> : vector<8x8xf32>
    %329 = tpu.matmul %327, %328, %cst_136 {dimension_numbers = #tpu.dot_dimension_numbers<[1], [1], [0], [0], [0, 0, 1, 0], [], []>} : vector<8x8xf32>, vector<8x8xf32>, vector<8x8xf32> -> vector<8x8xf32>
    %cst_137 = arith.constant dense<0xFF800000> : vector<8xf32>
    %330 = vector.multi_reduction <maximumf>, %329, %cst_137 [1] : vector<8x8xf32> to vector<8xf32>
    %331 = vector.shape_cast %330 : vector<8xf32> to vector<8x1xf32>
    %332 = vector.broadcast %331 : vector<8x1xf32> to vector<8x8xf32>
    %333 = arith.subf %329, %332 : vector<8x8xf32>
    %334 = math.exp %333 : vector<8x8xf32>
    %cst_138 = arith.constant dense<0.000000e+00> : vector<8xf32>
    %335 = vector.multi_reduction <add>, %334, %cst_138 [1] : vector<8x8xf32> to vector<8xf32>
    %336 = vector.shape_cast %335 : vector<8xf32> to vector<8x1xf32>
    %337 = tpu.reciprocal %336 {approx = true} : vector<8x1xf32> -> vector<8x1xf32>
    %338 = vector.broadcast %337 : vector<8x1xf32> to vector<8x8xf32>
    %339 = arith.mulf %334, %338 : vector<8x8xf32>
    %340 = vector.extract_strided_slice %326 {offsets = [0, 0], sizes = [8, 8], strides = [1, 1]} : vector<8x32xf32> to vector<8x8xf32>
    %cst_139 = arith.constant dense<0.000000e+00> : vector<8x8xf32>
    %341 = tpu.matmul %339, %340, %cst_139 {dimension_numbers = #tpu.dot_dimension_numbers<[1], [0], [0], [1], [0, 0, 1, 1], [], []>} : vector<8x8xf32>, vector<8x8xf32>, vector<8x8xf32> -> vector<8x8xf32>
    %342 = vector.extract_strided_slice %324 {offsets = [0, 8], sizes = [8, 8], strides = [1, 1]} : vector<8x32xf32> to vector<8x8xf32>
    %343 = vector.extract_strided_slice %325 {offsets = [0, 8], sizes = [8, 8], strides = [1, 1]} : vector<8x32xf32> to vector<8x8xf32>
    %cst_140 = arith.constant dense<0.000000e+00> : vector<8x8xf32>
    %344 = tpu.matmul %342, %343, %cst_140 {dimension_numbers = #tpu.dot_dimension_numbers<[1], [1], [0], [0], [0, 0, 1, 0], [], []>} : vector<8x8xf32>, vector<8x8xf32>, vector<8x8xf32> -> vector<8x8xf32>
    %cst_141 = arith.constant dense<0xFF800000> : vector<8xf32>
    %345 = vector.multi_reduction <maximumf>, %344, %cst_141 [1] : vector<8x8xf32> to vector<8xf32>
    %346 = vector.shape_cast %345 : vector<8xf32> to vector<8x1xf32>
    %347 = vector.broadcast %346 : vector<8x1xf32> to vector<8x8xf32>
    %348 = arith.subf %344, %347 : vector<8x8xf32>
    %349 = math.exp %348 : vector<8x8xf32>
    %cst_142 = arith.constant dense<0.000000e+00> : vector<8xf32>
    %350 = vector.multi_reduction <add>, %349, %cst_142 [1] : vector<8x8xf32> to vector<8xf32>
    %351 = vector.shape_cast %350 : vector<8xf32> to vector<8x1xf32>
    %352 = tpu.reciprocal %351 {approx = true} : vector<8x1xf32> -> vector<8x1xf32>
    %353 = vector.broadcast %352 : vector<8x1xf32> to vector<8x8xf32>
    %354 = arith.mulf %349, %353 : vector<8x8xf32>
    %355 = vector.extract_strided_slice %326 {offsets = [0, 8], sizes = [8, 8], strides = [1, 1]} : vector<8x32xf32> to vector<8x8xf32>
    %cst_143 = arith.constant dense<0.000000e+00> : vector<8x8xf32>
    %356 = tpu.matmul %354, %355, %cst_143 {dimension_numbers = #tpu.dot_dimension_numbers<[1], [0], [0], [1], [0, 0, 1, 1], [], []>} : vector<8x8xf32>, vector<8x8xf32>, vector<8x8xf32> -> vector<8x8xf32>
    %357 = vector.extract_strided_slice %324 {offsets = [0, 16], sizes = [8, 8], strides = [1, 1]} : vector<8x32xf32> to vector<8x8xf32>
    %358 = vector.extract_strided_slice %325 {offsets = [0, 16], sizes = [8, 8], strides = [1, 1]} : vector<8x32xf32> to vector<8x8xf32>
    %cst_144 = arith.constant dense<0.000000e+00> : vector<8x8xf32>
    %359 = tpu.matmul %357, %358, %cst_144 {dimension_numbers = #tpu.dot_dimension_numbers<[1], [1], [0], [0], [0, 0, 1, 0], [], []>} : vector<8x8xf32>, vector<8x8xf32>, vector<8x8xf32> -> vector<8x8xf32>
    %cst_145 = arith.constant dense<0xFF800000> : vector<8xf32>
    %360 = vector.multi_reduction <maximumf>, %359, %cst_145 [1] : vector<8x8xf32> to vector<8xf32>
    %361 = vector.shape_cast %360 : vector<8xf32> to vector<8x1xf32>
    %362 = vector.broadcast %361 : vector<8x1xf32> to vector<8x8xf32>
    %363 = arith.subf %359, %362 : vector<8x8xf32>
    %364 = math.exp %363 : vector<8x8xf32>
    %cst_146 = arith.constant dense<0.000000e+00> : vector<8xf32>
    %365 = vector.multi_reduction <add>, %364, %cst_146 [1] : vector<8x8xf32> to vector<8xf32>
    %366 = vector.shape_cast %365 : vector<8xf32> to vector<8x1xf32>
    %367 = tpu.reciprocal %366 {approx = true} : vector<8x1xf32> -> vector<8x1xf32>
    %368 = vector.broadcast %367 : vector<8x1xf32> to vector<8x8xf32>
    %369 = arith.mulf %364, %368 : vector<8x8xf32>
    %370 = vector.extract_strided_slice %326 {offsets = [0, 16], sizes = [8, 8], strides = [1, 1]} : vector<8x32xf32> to vector<8x8xf32>
    %cst_147 = arith.constant dense<0.000000e+00> : vector<8x8xf32>
    %371 = tpu.matmul %369, %370, %cst_147 {dimension_numbers = #tpu.dot_dimension_numbers<[1], [0], [0], [1], [0, 0, 1, 1], [], []>} : vector<8x8xf32>, vector<8x8xf32>, vector<8x8xf32> -> vector<8x8xf32>
    %372 = vector.extract_strided_slice %324 {offsets = [0, 24], sizes = [8, 8], strides = [1, 1]} : vector<8x32xf32> to vector<8x8xf32>
    %373 = vector.extract_strided_slice %325 {offsets = [0, 24], sizes = [8, 8], strides = [1, 1]} : vector<8x32xf32> to vector<8x8xf32>
    %cst_148 = arith.constant dense<0.000000e+00> : vector<8x8xf32>
    %374 = tpu.matmul %372, %373, %cst_148 {dimension_numbers = #tpu.dot_dimension_numbers<[1], [1], [0], [0], [0, 0, 1, 0], [], []>} : vector<8x8xf32>, vector<8x8xf32>, vector<8x8xf32> -> vector<8x8xf32>
    %cst_149 = arith.constant dense<0xFF800000> : vector<8xf32>
    %375 = vector.multi_reduction <maximumf>, %374, %cst_149 [1] : vector<8x8xf32> to vector<8xf32>
    %376 = vector.shape_cast %375 : vector<8xf32> to vector<8x1xf32>
    %377 = vector.broadcast %376 : vector<8x1xf32> to vector<8x8xf32>
    %378 = arith.subf %374, %377 : vector<8x8xf32>
    %379 = math.exp %378 : vector<8x8xf32>
    %cst_150 = arith.constant dense<0.000000e+00> : vector<8xf32>
    %380 = vector.multi_reduction <add>, %379, %cst_150 [1] : vector<8x8xf32> to vector<8xf32>
    %381 = vector.shape_cast %380 : vector<8xf32> to vector<8x1xf32>
    %382 = tpu.reciprocal %381 {approx = true} : vector<8x1xf32> -> vector<8x1xf32>
    %383 = vector.broadcast %382 : vector<8x1xf32> to vector<8x8xf32>
    %384 = arith.mulf %379, %383 : vector<8x8xf32>
    %385 = vector.extract_strided_slice %326 {offsets = [0, 24], sizes = [8, 8], strides = [1, 1]} : vector<8x32xf32> to vector<8x8xf32>
    %cst_151 = arith.constant dense<0.000000e+00> : vector<8x8xf32>
    %386 = tpu.matmul %384, %385, %cst_151 {dimension_numbers = #tpu.dot_dimension_numbers<[1], [0], [0], [1], [0, 0, 1, 1], [], []>} : vector<8x8xf32>, vector<8x8xf32>, vector<8x8xf32> -> vector<8x8xf32>
    %387 = tpu.concatenate %341, %356, %371, %386 in 1 : vector<8x8xf32>, vector<8x8xf32>, vector<8x8xf32>, vector<8x8xf32> -> vector<8x32xf32>
    %388 = tpu.concatenate %323, %387 in 0 : vector<8x32xf32>, vector<8x32xf32> -> vector<16x32xf32>
    %c1_152 = arith.constant 1 : index
    %c0_153 = arith.constant 0 : index
    %c0_154 = arith.constant 0 : index
    %389 = vector.load %arg8[%c1_152, %c0_153, %c0_154] : memref<2x32x32xf32, #tpu.memory_space<vmem>>, vector<1x32x32xf32>
    %390 = vector.shape_cast %389 : vector<1x32x32xf32> to vector<32x32xf32>
    %cst_155 = arith.constant dense<0.000000e+00> : vector<16x32xf32>
    %391 = tpu.matmul %388, %390, %cst_155 {dimension_numbers = #tpu.dot_dimension_numbers<[1], [0], [0], [1], [0, 0, 1, 1], [], []>} : vector<16x32xf32>, vector<32x32xf32>, vector<16x32xf32> -> vector<16x32xf32>
    %c1_156 = arith.constant 1 : index
    %c0_157 = arith.constant 0 : index
    %c0_158 = arith.constant 0 : index
    %392 = vector.load %arg9[%c1_156, %c0_157, %c0_158] : memref<2x1x32xf32, #tpu.memory_space<vmem>>, vector<1x1x32xf32>
    %393 = vector.shape_cast %392 : vector<1x1x32xf32> to vector<1x32xf32>
    %394 = vector.broadcast %393 : vector<1x32xf32> to vector<16x32xf32>
    %395 = arith.addf %391, %394 : vector<16x32xf32>
    %396 = arith.addf %238, %395 : vector<16x32xf32>
    %c1_159 = arith.constant 1 : index
    %c0_160 = arith.constant 0 : index
    %c0_161 = arith.constant 0 : index
    %397 = vector.load %arg10[%c1_159, %c0_160, %c0_161] : memref<2x1x32xf32, #tpu.memory_space<vmem>>, vector<1x1x32xf32>
    %398 = vector.shape_cast %397 : vector<1x1x32xf32> to vector<1x32xf32>
    %c1_162 = arith.constant 1 : index
    %c0_163 = arith.constant 0 : index
    %c0_164 = arith.constant 0 : index
    %399 = vector.load %arg11[%c1_162, %c0_163, %c0_164] : memref<2x1x32xf32, #tpu.memory_space<vmem>>, vector<1x1x32xf32>
    %400 = vector.shape_cast %399 : vector<1x1x32xf32> to vector<1x32xf32>
    %cst_165 = arith.constant dense<0.000000e+00> : vector<16xf32>
    %401 = vector.multi_reduction <add>, %396, %cst_165 [1] : vector<16x32xf32> to vector<16xf32>
    %402 = vector.shape_cast %401 : vector<16xf32> to vector<16x1xf32>
    %cst_166 = arith.constant 3.200000e+01 : f32
    %403 = vector.broadcast %cst_166 : f32 to vector<16x1xf32>
    %404 = arith.divf %402, %403 : vector<16x1xf32>
    %405 = vector.broadcast %404 : vector<16x1xf32> to vector<16x32xf32>
    %406 = arith.subf %396, %405 : vector<16x32xf32>
    %407 = arith.mulf %406, %406 : vector<16x32xf32>
    %cst_167 = arith.constant dense<0.000000e+00> : vector<16xf32>
    %408 = vector.multi_reduction <add>, %407, %cst_167 [1] : vector<16x32xf32> to vector<16xf32>
    %409 = vector.shape_cast %408 : vector<16xf32> to vector<16x1xf32>
    %cst_168 = arith.constant 3.200000e+01 : f32
    %410 = vector.broadcast %cst_168 : f32 to vector<16x1xf32>
    %411 = arith.divf %409, %410 : vector<16x1xf32>
    %412 = vector.broadcast %404 : vector<16x1xf32> to vector<16x32xf32>
    %413 = arith.subf %396, %412 : vector<16x32xf32>
    %cst_169 = arith.constant 9.99999974E-6 : f32
    %414 = vector.broadcast %cst_169 : f32 to vector<16x1xf32>
    %415 = arith.addf %411, %414 : vector<16x1xf32>
    %416 = math.rsqrt %415 : vector<16x1xf32>
    %417 = vector.broadcast %416 : vector<16x1xf32> to vector<16x32xf32>
    %418 = arith.mulf %413, %417 : vector<16x32xf32>
    %419 = vector.broadcast %398 : vector<1x32xf32> to vector<16x32xf32>
    %420 = arith.mulf %418, %419 : vector<16x32xf32>
    %421 = vector.broadcast %400 : vector<1x32xf32> to vector<16x32xf32>
    %422 = arith.addf %420, %421 : vector<16x32xf32>
    %c1_170 = arith.constant 1 : index
    %c0_171 = arith.constant 0 : index
    %c0_172 = arith.constant 0 : index
    %423 = vector.load %arg12[%c1_170, %c0_171, %c0_172] : memref<2x32x64xf32, #tpu.memory_space<vmem>>, vector<1x32x64xf32>
    %424 = vector.shape_cast %423 : vector<1x32x64xf32> to vector<32x64xf32>
    %cst_173 = arith.constant dense<0.000000e+00> : vector<16x64xf32>
    %425 = tpu.matmul %422, %424, %cst_173 {dimension_numbers = #tpu.dot_dimension_numbers<[1], [0], [0], [1], [0, 0, 1, 1], [], []>} : vector<16x32xf32>, vector<32x64xf32>, vector<16x64xf32> -> vector<16x64xf32>
    %c1_174 = arith.constant 1 : index
    %c0_175 = arith.constant 0 : index
    %c0_176 = arith.constant 0 : index
    %426 = vector.load %arg13[%c1_174, %c0_175, %c0_176] : memref<2x1x64xf32, #tpu.memory_space<vmem>>, vector<1x1x64xf32>
    %427 = vector.shape_cast %426 : vector<1x1x64xf32> to vector<1x64xf32>
    %428 = vector.broadcast %427 : vector<1x64xf32> to vector<16x64xf32>
    %429 = arith.addf %425, %428 : vector<16x64xf32>
    %430 = arith.mulf %429, %429 : vector<16x64xf32>
    %431 = arith.mulf %429, %430 : vector<16x64xf32>
    %cst_177 = arith.constant 4.471500e-02 : f32
    %432 = vector.broadcast %cst_177 : f32 to vector<16x64xf32>
    %433 = arith.mulf %432, %431 : vector<16x64xf32>
    %434 = arith.addf %429, %433 : vector<16x64xf32>
    %cst_178 = arith.constant 0.797884583 : f32
    %435 = vector.broadcast %cst_178 : f32 to vector<16x64xf32>
    %436 = arith.mulf %435, %434 : vector<16x64xf32>
    %437 = math.tanh %436 : vector<16x64xf32>
    %cst_179 = arith.constant 1.000000e+00 : f32
    %438 = vector.broadcast %cst_179 : f32 to vector<16x64xf32>
    %439 = arith.addf %438, %437 : vector<16x64xf32>
    %cst_180 = arith.constant 5.000000e-01 : f32
    %440 = vector.broadcast %cst_180 : f32 to vector<16x64xf32>
    %441 = arith.mulf %440, %439 : vector<16x64xf32>
    %442 = arith.mulf %429, %441 : vector<16x64xf32>
    %c1_181 = arith.constant 1 : index
    %c0_182 = arith.constant 0 : index
    %c0_183 = arith.constant 0 : index
    %443 = vector.load %arg14[%c1_181, %c0_182, %c0_183] : memref<2x64x32xf32, #tpu.memory_space<vmem>>, vector<1x64x32xf32>
    %444 = vector.shape_cast %443 : vector<1x64x32xf32> to vector<64x32xf32>
    %cst_184 = arith.constant dense<0.000000e+00> : vector<16x32xf32>
    %445 = tpu.matmul %442, %444, %cst_184 {dimension_numbers = #tpu.dot_dimension_numbers<[1], [0], [0], [1], [0, 0, 1, 1], [], []>} : vector<16x64xf32>, vector<64x32xf32>, vector<16x32xf32> -> vector<16x32xf32>
    %c1_185 = arith.constant 1 : index
    %c0_186 = arith.constant 0 : index
    %c0_187 = arith.constant 0 : index
    %446 = vector.load %arg15[%c1_185, %c0_186, %c0_187] : memref<2x1x32xf32, #tpu.memory_space<vmem>>, vector<1x1x32xf32>
    %447 = vector.shape_cast %446 : vector<1x1x32xf32> to vector<1x32xf32>
    %448 = vector.broadcast %447 : vector<1x32xf32> to vector<16x32xf32>
    %449 = arith.addf %445, %448 : vector<16x32xf32>
    %450 = arith.addf %422, %449 : vector<16x32xf32>
    %c1_188 = arith.constant 1 : index
    %c0_189 = arith.constant 0 : index
    %c0_190 = arith.constant 0 : index
    %451 = vector.load %arg16[%c1_188, %c0_189, %c0_190] : memref<2x1x32xf32, #tpu.memory_space<vmem>>, vector<1x1x32xf32>
    %452 = vector.shape_cast %451 : vector<1x1x32xf32> to vector<1x32xf32>
    %c1_191 = arith.constant 1 : index
    %c0_192 = arith.constant 0 : index
    %c0_193 = arith.constant 0 : index
    %453 = vector.load %arg17[%c1_191, %c0_192, %c0_193] : memref<2x1x32xf32, #tpu.memory_space<vmem>>, vector<1x1x32xf32>
    %454 = vector.shape_cast %453 : vector<1x1x32xf32> to vector<1x32xf32>
    %cst_194 = arith.constant dense<0.000000e+00> : vector<16xf32>
    %455 = vector.multi_reduction <add>, %450, %cst_194 [1] : vector<16x32xf32> to vector<16xf32>
    %456 = vector.shape_cast %455 : vector<16xf32> to vector<16x1xf32>
    %cst_195 = arith.constant 3.200000e+01 : f32
    %457 = vector.broadcast %cst_195 : f32 to vector<16x1xf32>
    %458 = arith.divf %456, %457 : vector<16x1xf32>
    %459 = vector.broadcast %458 : vector<16x1xf32> to vector<16x32xf32>
    %460 = arith.subf %450, %459 : vector<16x32xf32>
    %461 = arith.mulf %460, %460 : vector<16x32xf32>
    %cst_196 = arith.constant dense<0.000000e+00> : vector<16xf32>
    %462 = vector.multi_reduction <add>, %461, %cst_196 [1] : vector<16x32xf32> to vector<16xf32>
    %463 = vector.shape_cast %462 : vector<16xf32> to vector<16x1xf32>
    %cst_197 = arith.constant 3.200000e+01 : f32
    %464 = vector.broadcast %cst_197 : f32 to vector<16x1xf32>
    %465 = arith.divf %463, %464 : vector<16x1xf32>
    %466 = vector.broadcast %458 : vector<16x1xf32> to vector<16x32xf32>
    %467 = arith.subf %450, %466 : vector<16x32xf32>
    %cst_198 = arith.constant 9.99999974E-6 : f32
    %468 = vector.broadcast %cst_198 : f32 to vector<16x1xf32>
    %469 = arith.addf %465, %468 : vector<16x1xf32>
    %470 = math.rsqrt %469 : vector<16x1xf32>
    %471 = vector.broadcast %470 : vector<16x1xf32> to vector<16x32xf32>
    %472 = arith.mulf %467, %471 : vector<16x32xf32>
    %473 = vector.broadcast %452 : vector<1x32xf32> to vector<16x32xf32>
    %474 = arith.mulf %472, %473 : vector<16x32xf32>
    %475 = vector.broadcast %454 : vector<1x32xf32> to vector<16x32xf32>
    %476 = arith.addf %474, %475 : vector<16x32xf32>
    %477 = vector.extract_strided_slice %476 {offsets = [0, 0], sizes = [1, 32], strides = [1, 1]} : vector<16x32xf32> to vector<1x32xf32>
    %478 = vector.extract_strided_slice %476 {offsets = [8, 0], sizes = [1, 32], strides = [1, 1]} : vector<16x32xf32> to vector<1x32xf32>
    %479 = tpu.concatenate %477, %478 in 0 : vector<1x32xf32>, vector<1x32xf32> -> vector<2x32xf32>
    %c0_199 = arith.constant 0 : index
    %c0_200 = arith.constant 0 : index
    %480 = vector.load %arg18[%c0_199, %c0_200] : memref<32x20xf32, #tpu.memory_space<vmem>>, vector<32x20xf32>
    %cst_201 = arith.constant dense<0.000000e+00> : vector<2x20xf32>
    %481 = tpu.matmul %479, %480, %cst_201 {dimension_numbers = #tpu.dot_dimension_numbers<[1], [0], [0], [1], [0, 0, 1, 1], [], []>} : vector<2x32xf32>, vector<32x20xf32>, vector<2x20xf32> -> vector<2x20xf32>
    %c0_202 = arith.constant 0 : index
    %c0_203 = arith.constant 0 : index
    %482 = vector.load %arg19[%c0_202, %c0_203] : memref<1x20xf32, #tpu.memory_space<vmem>>, vector<1x20xf32>
    %483 = vector.broadcast %482 : vector<1x20xf32> to vector<2x20xf32>
    %484 = arith.addf %481, %483 : vector<2x20xf32>
    %485 = vector.extract_strided_slice %484 {offsets = [0, 0], sizes = [2, 16], strides = [1, 1]} : vector<2x20xf32> to vector<2x16xf32>
    %c0_204 = arith.constant 0 : index
    %c0_205 = arith.constant 0 : index
    %486 = vector.load %arg20[%c0_204, %c0_205] : memref<2x16xf32, #tpu.memory_space<vmem>>, vector<2x16xf32>
    tpu.vector_store %arg20[%c0_204, %c0_205], %485 {strides = array<i32>} : memref<2x16xf32, #tpu.memory_space<vmem>>, vector<2x16xf32>,
    %487 = vector.extract_strided_slice %484 {offsets = [0, 16], sizes = [2, 4], strides = [1, 1]} : vector<2x20xf32> to vector<2x4xf32>
    %c0_206 = arith.constant 0 : index
    %c0_207 = arith.constant 0 : index
    %488 = vector.load %arg21[%c0_206, %c0_207] : memref<2x4xf32, #tpu.memory_space<vmem>>, vector<2x4xf32>
    tpu.vector_store %arg21[%c0_206, %c0_207], %487 {strides = array<i32>} : memref<2x4xf32, #tpu.memory_space<vmem>>, vector<2x4xf32>,
    return
  }
  func.func @transform_0(%arg0: i32) -> (i32, i32) {
    %c0_i32 = arith.constant 0 : i32
    %c0_i32_0 = arith.constant 0 : i32
    %c0_i32_1 = arith.constant 0 : i32
    return %c0_i32, %c0_i32_0 : i32, i32
  }
  func.func @transform_1(%arg0: i32) -> (i32, i32, i32) {
    %c0_i32 = arith.constant 0 : i32
    %c0_i32_0 = arith.constant 0 : i32
    %c0_i32_1 = arith.constant 0 : i32
    %c0_i32_2 = arith.constant 0 : i32
    return %c0_i32, %c0_i32_0, %c0_i32_1 : i32, i32, i32
  }
  func.func @transform_2(%arg0: i32) -> (i32, i32, i32) {
    %c0_i32 = arith.constant 0 : i32
    %c0_i32_0 = arith.constant 0 : i32
    %c0_i32_1 = arith.constant 0 : i32
    %c0_i32_2 = arith.constant 0 : i32
    return %c0_i32, %c0_i32_0, %c0_i32_1 : i32, i32, i32
  }
  func.func @transform_3(%arg0: i32) -> (i32, i32, i32) {
    %c0_i32 = arith.constant 0 : i32
    %c0_i32_0 = arith.constant 0 : i32
    %c0_i32_1 = arith.constant 0 : i32
    %c0_i32_2 = arith.constant 0 : i32
    return %c0_i32, %c0_i32_0, %c0_i32_1 : i32, i32, i32
  }
  func.func @transform_4(%arg0: i32) -> (i32, i32, i32) {
    %c0_i32 = arith.constant 0 : i32
    %c0_i32_0 = arith.constant 0 : i32
    %c0_i32_1 = arith.constant 0 : i32
    %c0_i32_2 = arith.constant 0 : i32
    return %c0_i32, %c0_i32_0, %c0_i32_1 : i32, i32, i32
  }
  func.func @transform_5(%arg0: i32) -> (i32, i32, i32) {
    %c0_i32 = arith.constant 0 : i32
    %c0_i32_0 = arith.constant 0 : i32
    %c0_i32_1 = arith.constant 0 : i32
    %c0_i32_2 = arith.constant 0 : i32
    return %c0_i32, %c0_i32_0, %c0_i32_1 : i32, i32, i32
  }
  func.func @transform_6(%arg0: i32) -> (i32, i32, i32) {
    %c0_i32 = arith.constant 0 : i32
    %c0_i32_0 = arith.constant 0 : i32
    %c0_i32_1 = arith.constant 0 : i32
    %c0_i32_2 = arith.constant 0 : i32
    return %c0_i32, %c0_i32_0, %c0_i32_1 : i32, i32, i32
  }
  func.func @transform_7(%arg0: i32) -> (i32, i32, i32) {
    %c0_i32 = arith.constant 0 : i32
    %c0_i32_0 = arith.constant 0 : i32
    %c0_i32_1 = arith.constant 0 : i32
    %c0_i32_2 = arith.constant 0 : i32
    return %c0_i32, %c0_i32_0, %c0_i32_1 : i32, i32, i32
  }
  func.func @transform_8(%arg0: i32) -> (i32, i32, i32) {
    %c0_i32 = arith.constant 0 : i32
    %c0_i32_0 = arith.constant 0 : i32
    %c0_i32_1 = arith.constant 0 : i32
    %c0_i32_2 = arith.constant 0 : i32
    return %c0_i32, %c0_i32_0, %c0_i32_1 : i32, i32, i32
  }
  func.func @transform_9(%arg0: i32) -> (i32, i32, i32) {
    %c0_i32 = arith.constant 0 : i32
    %c0_i32_0 = arith.constant 0 : i32
    %c0_i32_1 = arith.constant 0 : i32
    %c0_i32_2 = arith.constant 0 : i32
    return %c0_i32, %c0_i32_0, %c0_i32_1 : i32, i32, i32
  }
  func.func @transform_10(%arg0: i32) -> (i32, i32, i32) {
    %c0_i32 = arith.constant 0 : i32
    %c0_i32_0 = arith.constant 0 : i32
    %c0_i32_1 = arith.constant 0 : i32
    %c0_i32_2 = arith.constant 0 : i32
    return %c0_i32, %c0_i32_0, %c0_i32_1 : i32, i32, i32
  }
  func.func @transform_11(%arg0: i32) -> (i32, i32, i32) {
    %c0_i32 = arith.constant 0 : i32
    %c0_i32_0 = arith.constant 0 : i32
    %c0_i32_1 = arith.constant 0 : i32
    %c0_i32_2 = arith.constant 0 : i32
    return %c0_i32, %c0_i32_0, %c0_i32_1 : i32, i32, i32
  }
  func.func @transform_12(%arg0: i32) -> (i32, i32, i32) {
    %c0_i32 = arith.constant 0 : i32
    %c0_i32_0 = arith.constant 0 : i32
    %c0_i32_1 = arith.constant 0 : i32
    %c0_i32_2 = arith.constant 0 : i32
    return %c0_i32, %c0_i32_0, %c0_i32_1 : i32, i32, i32
  }
  func.func @transform_13(%arg0: i32) -> (i32, i32, i32) {
    %c0_i32 = arith.constant 0 : i32
    %c0_i32_0 = arith.constant 0 : i32
    %c0_i32_1 = arith.constant 0 : i32
    %c0_i32_2 = arith.constant 0 : i32
    return %c0_i32, %c0_i32_0, %c0_i32_1 : i32, i32, i32
  }
  func.func @transform_14(%arg0: i32) -> (i32, i32, i32) {
    %c0_i32 = arith.constant 0 : i32
    %c0_i32_0 = arith.constant 0 : i32
    %c0_i32_1 = arith.constant 0 : i32
    %c0_i32_2 = arith.constant 0 : i32
    return %c0_i32, %c0_i32_0, %c0_i32_1 : i32, i32, i32
  }
  func.func @transform_15(%arg0: i32) -> (i32, i32, i32) {
    %c0_i32 = arith.constant 0 : i32
    %c0_i32_0 = arith.constant 0 : i32
    %c0_i32_1 = arith.constant 0 : i32
    %c0_i32_2 = arith.constant 0 : i32
    return %c0_i32, %c0_i32_0, %c0_i32_1 : i32, i32, i32
  }
  func.func @transform_16(%arg0: i32) -> (i32, i32, i32) {
    %c0_i32 = arith.constant 0 : i32
    %c0_i32_0 = arith.constant 0 : i32
    %c0_i32_1 = arith.constant 0 : i32
    %c0_i32_2 = arith.constant 0 : i32
    return %c0_i32, %c0_i32_0, %c0_i32_1 : i32, i32, i32
  }
  func.func @transform_17(%arg0: i32) -> (i32, i32) {
    %c0_i32 = arith.constant 0 : i32
    %c0_i32_0 = arith.constant 0 : i32
    %c0_i32_1 = arith.constant 0 : i32
    return %c0_i32, %c0_i32_0 : i32, i32
  }
  func.func @transform_18(%arg0: i32) -> (i32, i32) {
    %c0_i32 = arith.constant 0 : i32
    %c0_i32_0 = arith.constant 0 : i32
    %c0_i32_1 = arith.constant 0 : i32
    return %c0_i32, %c0_i32_0 : i32, i32
  }
  func.func @transform_19(%arg0: i32) -> (i32, i32) {
    %c0_i32 = arith.constant 0 : i32
    %c0_i32_0 = arith.constant 0 : i32
    %c0_i32_1 = arith.constant 0 : i32
    return %c0_i32, %c0_i32_0 : i32, i32
  }
  func.func @transform_20(%arg0: i32) -> (i32, i32) {
    %c0_i32 = arith.constant 0 : i32
    %c0_i32_0 = arith.constant 0 : i32
    %c0_i32_1 = arith.constant 0 : i32
    return %c0_i32, %c0_i32_0 : i32, i32
  }
}

</mosaic_0001>

<bundles_post_ra>
// kernel: ernie_forward.1
= control target key start
LH: loop header
LB: loop body
LE: loop exit
PB: predicated region body
PF: predicated region fallthrough
CT: control target
= control target key end

     0   :  { %s2887_s0 = inlined_call_operand.vmem [shape: f32[16,32], index: 0, kind: input, shape index: {}]   ;;  %s2888_s1 = inlined_call_operand.vmem [shape: f32[2,32,32], index: 1, kind: input, shape index: {}]   ;;  %s2889_s2 = inlined_call_operand.vmem [shape: f32[2,1,32], index: 2, kind: input, shape index: {}]   ;;  %s2890_s3 = inlined_call_operand.vmem [shape: f32[2,32,32], index: 3, kind: input, shape index: {}]   ;;  %s2891_s4 = inlined_call_operand.vmem [shape: f32[2,1,32], index: 4, kind: input, shape index: {}]   ;;  %s2892_s5 = inlined_call_operand.vmem [shape: f32[2,32,32], index: 5, kind: input, shape index: {}]   ;;  %s2893_s6 = inlined_call_operand.vmem [shape: f32[2,1,32], index: 6, kind: input, shape index: {}]   ;;  %s2894_s7 = inlined_call_operand.vmem [shape: f32[2,32,32], index: 7, kind: input, shape index: {}]   ;;  %s2895_s8 = inlined_call_operand.vmem [shape: f32[2,1,32], index: 8, kind: input, shape index: {}]   ;;  %s2896_s9 = inlined_call_operand.vmem [shape: f32[2,1,32], index: 9, kind: input, shape index: {}]   ;;  %s2897_s10 = inlined_call_operand.vmem [shape: f32[2,1,32], index: 10, kind: input, shape index: {}]   ;;  %s2898_s11 = inlined_call_operand.vmem [shape: f32[2,32,64], index: 11, kind: input, shape index: {}]   ;;  %s2899_s12 = inlined_call_operand.vmem [shape: f32[2,1,64], index: 12, kind: input, shape index: {}]   ;;  %s2900_s13 = inlined_call_operand.vmem [shape: f32[2,64,32], index: 13, kind: input, shape index: {}]   ;;  %s2901_s14 = inlined_call_operand.vmem [shape: f32[2,1,32], index: 14, kind: input, shape index: {}]   ;;  %s2902_s15 = inlined_call_operand.vmem [shape: f32[2,1,32], index: 15, kind: input, shape index: {}]   ;;  %s2903_s16 = inlined_call_operand.vmem [shape: f32[2,1,32], index: 16, kind: input, shape index: {}]   ;;  %s2904_s17 = inlined_call_operand.vmem [shape: f32[32,20], index: 17, kind: input, shape index: {}]   ;;  %s2905_s18 = inlined_call_operand.vmem [shape: f32[1,20], index: 18, kind: input, shape index: {}]   ;;  %s2906_s19 = inlined_call_operand.hbm [shape: f32[2,16], index: 19, kind: output, shape index: {0}]   ;;  %s2907_s20 = inlined_call_operand.hbm [shape: f32[2,4], index: 20, kind: output, shape index: {1}]  }
   0x1   :  { %2923 = sst [smem:[#allocation8_spill]] %s2887_s0 }
   0x2   :  { %2924 = sst [smem:[#allocation9_spill]] %s2888_s1 }
   0x3   :  { %2925 = sst [smem:[#allocation10_spill]] %s2889_s2 }
   0x4   :  { %2926 = sst [smem:[#allocation11_spill]] %s2890_s3 }
   0x5   :  { %2927 = sst [smem:[#allocation12_spill]] %s2891_s4 }
   0x6   :  { %26 = vsyncpa [#allocation3], 0  ;;  %s2928_s23 = sld [smem:[#allocation9_spill]]  ;;  %v140_v5 = vld [vmem:[%s2892_s5 + $0x18] sm:$0xff]  ;;  %v139_v6 = vld [vmem:[%s2892_s5 + $0x10] sm:$0xff]  ;;  %vm76_vm0 = vcmask 261120  }
   0x7   :  { %s2929_s29 = sld [smem:[#allocation8_spill]]  ;;  %157 = vmatpush.msra.mxu2 %v140_v5  ;;  %v138_v9 = vld [vmem:[%s2892_s5 + $0x8] sm:$0xff]  ;;  %v137_v11 = vld [vmem:[%s2892_s5] sm:$0xff] }
   0x8   :  { %s2930_s3 = sld [smem:[#allocation11_spill]] }
   0x9   :  { %158 = vmatpush.msra.mxu2 %v139_v6 }
   0xb   :  { %159 = vmatpush.msra.mxu2 %v138_v9 }
   0xc   :  { %v71_v0 = vld [vmem:[%s2928_s23 + $0x18] sm:$0xff]  ;;  %v70_v1 = vld [vmem:[%s2928_s23 + $0x10] sm:$0xff]  ;;  %v69_v2 = vld [vmem:[%s2928_s23 + $0x8] sm:$0xff] }
   0xd   :  { %95 = vmatpush.msra.mxu0 %v71_v0  ;;  %2063 = vmatpush.msra.mxu1 %v71_v0  ;;  %v68_v3 = vld [vmem:[%s2928_s23] sm:$0xff]  ;;  %v2379_v7 = vld [vmem:[%s2929_s29 + $0x8] sm:$0xff] }
   0xe   :  { %v2368_v4 = vld [vmem:[%s2929_s29] sm:$0xff]  ;;  %v109_v8 = vld [vmem:[%s2930_s3 + $0x18] sm:$0xff]  ;;  %v108_v10 = vld [vmem:[%s2930_s3 + $0x10] sm:$0xff]  ;;  %160 = vmatpush.msra.mxu2 %v137_v11 }
   0xf   :  { %96 = vmatpush.msra.mxu0 %v70_v1  ;;  %2064 = vmatpush.msra.mxu1 %v70_v1  ;;  %v107_v12 = vld [vmem:[%s2930_s3 + $0x8] sm:$0xff]  ;;  %v106_v13 = vld [vmem:[%s2930_s3] sm:$0xff] }
  0x10   :  { %1956 = vmatmul.msk.f32.vlgmr.msra.gmra.mxu2 %vm76_vm0, %v2368_v4 }
  0x11   :  { %97 = vmatpush.msra.mxu0 %v69_v2  ;;  %2065 = vmatpush.msra.mxu1 %v69_v2 }
  0x13   :  { %98 = vmatpush.msra.mxu0 %v68_v3  ;;  %2066 = vmatpush.msra.mxu1 %v68_v3 }
  0x14   :  { %1952 = vmatmul.msk.f32.vlgmr.msra.gmra.mxu0 %vm76_vm0, %v2368_v4  ;;  %1953 = vmatmul.msk.f32.vlgmr.msra.gmra.mxu1 %vm76_vm0, %v2379_v7 }
  0x15   :  { %126 = vmatpush.msrb.mxu1 %v109_v8 }
  0x17   :  { %127 = vmatpush.msrb.mxu1 %v108_v10 }
  0x18   :  { %27 = vsyncpa [#allocation5], 0  ;;  %1957 = vmatmul.msk.f32.gmra.mxu2 %vm76_vm0, %v2379_v7  ;;  %s2931_s25 = sld [smem:[#allocation10_spill]]  ;;  %s2239_s26 = smov 120   ;;  %vm168_vm1 = vcmask 64512   ;;  %vm438_vm2 = vcmask 130048  }
  0x19   :  { %128 = vmatpush.msrb.mxu1 %v107_v12  ;;  %s2932_s4 = sld [smem:[#allocation12_spill]]  ;;  %s2921_s30 = smov 112   ;;  %v2432_v24 = vld [vmem:[%s2893_s6] ss:$0 sm:$0xff]  ;;  %vm440_vm3 = vcmask 195584   ;;  %vm882_vm11 = vcmask 523264  }
  0x1a   :  { %s2913_s29 = smov 104   ;;  %s2917_s1 = smov 16  }
  0x1b   :  { %129 = vmatpush.msrb.mxu1 %v106_v13  ;;  %s2915_s22 = smov 8   ;;  %s2919_s24 = smov 24  }
  0x1c   :  { %1954 = vmatmul.msk.f32.vlgmr.msrb.gmra.mxu1 %vm76_vm0, %v2368_v4  ;;  %s1927_s21 = sshll.u32 %s2906_s19, 4  ;;  %s1928_s21 = int_to_ptr.hbm [resolvable:$true] %s1927_s21 }
  0x1e   :  { %v2076_v14 = vld [vmem:[%s2931_s25] ss:$0 sm:$0xff] }
  0x1f   :  { %v2077_v18 = vld [vmem:[%s2932_s4] ss:$0 sm:$0xff] }
  0x24   :  { %1955 = vmatmul.msk.f32.gmra.mxu1 %vm76_vm0, %v2379_v7 }
  0x91   :  { %v100_v15 = vpop.f32.mrf.mxu0  ;;  %v103_v16 = vpop.f32.mrf.mxu1 }
  0x92   :  { %v101_v17 = vadd.f32 %v2076_v14, %v100_v15  ;;  %v104_v23 = vadd.f32 %v2076_v14, %v103_v16 }
  0x93   :  { %v162_v25 = vpop.f32.mrf.mxu2 }
  0x94   :  { %229 = vrot.lane.b32.xlu1 %v101_v17, %s2239_s26  ;;  %v2435_v26 = vadd.f32 %v2432_v24, %v162_v25 }
  0x99   :  { %v131_v19 = vpop.f32.mrf.mxu1 }
  0x9a   :  { %v132_v20 = vadd.f32 %v2077_v18, %v131_v19 }
  0x9c   :  { %297 = vrot.lane.b32.xlu2 %v132_v20, %s2921_s30  ;;  %1958 = vmatpush.xpose.msk.msra.mxu3 %vm168_vm1, %v132_v20 }
  0x9d   :  { %231 = vrot.lane.b32.xlu1 %v132_v20, %s2239_s26 }
  0x9f   :  { %1959 = vmatmul.msk.f32.vlgmr.msra.gmra.mxu3 %vm168_vm1, %v101_v17 }
  0xa0   :  { %224 = vmatpush.msrb.mxu3 %v2435_v26 }
  0xa1   :  { %v134_v21 = vpop.f32.mrf.mxu1 }
  0xa2   :  { %v135_v22 = vadd.f32 %v2077_v18, %v134_v21 }
  0xa4   :  { %362 = vrot.lane.b32.xlu2 %v132_v20, %s2913_s29 }
  0xa5   :  { %360 = vrot.lane.b32.xlu1 %v101_v17, %s2913_s29 }
  0xac   :  { %504 = vrot.lane.b32.xlu2 %v135_v22, %s2239_s26 }
  0xad   :  { %502 = vrot.lane.b32.xlu1 %v104_v23, %s2239_s26 }
  0xb4   :  { %570 = vrot.lane.b32.xlu2 %v135_v22, %s2921_s30 }
  0xb5   :  { %635 = vrot.lane.b32.xlu1 %v135_v22, %s2913_s29 }
  0xbc   :  { %568 = vrot.lane.b32.xlu2 %v104_v23, %s2921_s30 }
  0xf6   :  { %v298_v27 = vpop.permute.xlu2 %297 }
  0xf7   :  { %1964 = vmatpush.xpose.msk.msra.mxu1 %vm168_vm1, %v298_v27 }
  0xfb   :  { %1970 = vmatpush.xpose.msk.msrb.mxu1 %vm168_vm1, %v135_v22 }
  0xfe   :  { %v363_v32 = vpop.permute.xlu2 %362 }
 0x106   :  { %v230_v28 = vpop.permute.xlu1 %229  ;;  %v505_v36 = vpop.permute.xlu2 %504 }
 0x10e   :  { %v571_v40 = vpop.permute.xlu2 %570 }
 0x10f   :  { %v232_v29 = vpop.permute.xlu1 %231 }
 0x110   :  { %1961 = vmatpush.xpose.msk.msra.mxu3 %vm168_vm1, %v232_v29 }
 0x116   :  { %v569_v41 = vpop.permute.xlu2 %568 }
 0x117   :  { %v361_v43 = vpop.permute.xlu1 %360 }
 0x11f   :  { %v503_v46 = vpop.permute.xlu1 %502 }
 0x122   :  { %v192_v30 = vpop.f32.mrf.mxu3 }
 0x123   :  { %v195_v31 = vsel %vm168_vm1, %v192_v30, -inf }
 0x124   :  { %196 = vmax.xlane.f32.xlu0 %v195_v31  ;;  %v165_v31 = vpop.f32.mrf.mxu2 }
 0x127   :  { %v636_v49 = vpop.permute.xlu1 %635 }
 0x138   :  { %295 = vrot.lane.b32.xlu0 %v101_v17, %s2921_s30 }
 0x197   :  { %v197_v33 = vpop.xlane.xlu0 %196 }
 0x198   :  { %v198_v34 = vsub.f32 %v192_v30, %v197_v33 }
 0x19a   :  { %v199_v35 = vmul.f32 1.442695, %v198_v34 }
 0x19c   :  { %2097 = vpow2.f32 %v199_v35 }
 0x1a2   :  { %v2098_v37 = vpop.eup %2097 }
 0x1a3   :  { %v201_v38 = vsel %vm168_vm1, %v2098_v37, 0.0 }
 0x1a4   :  { %202 = vadd.xlane.f32.xlu0 %v201_v38 }
 0x1aa   :  { %v296_v39 = vpop.permute.xlu0 %295 }
 0x1ab   :  { %1965 = vmatmul.msk.f32.vlgmr.msra.gmra.mxu1 %vm168_vm1, %v296_v39 }
 0x1ac   :  { %1976 = vmatpush.xpose.msk.msra.mxu1 %vm168_vm1, %v571_v40 }
 0x1b3   :  { %1971 = vmatmul.msk.f32.vlgmr.msrb.gmra.mxu1 %vm168_vm1, %v104_v23 }
 0x1b8   :  { %633 = vrot.lane.b32.xlu0 %v104_v23, %s2913_s29 }
 0x1bb   :  { %1977 = vmatmul.msk.f32.vlgmr.msra.gmra.mxu1 %vm168_vm1, %v569_v41 }
 0x217   :  { %v203_v42 = vpop.xlane.xlu0 %202 }
 0x218   :  { %2099 = vrcp.f32 %v203_v42 }
 0x21e   :  { %v2100_v44 = vpop.eup %2099 }
 0x21f   :  { %v205_v45 = vmul.f32 %v2100_v44, %v2098_v37 }
 0x221   :  { %1960 = vmatmul.msk.f32.vlgmr.msrb.gmra.mxu3 %vm168_vm1, %v205_v45 }
 0x222   :  { %1967 = vmatpush.xpose.msk.msrb.mxu3 %vm168_vm1, %v363_v32  ;;  %v166_v32 = vadd.f32 %v2432_v24, %v165_v31 }
 0x228   :  { %v320_v47 = vpop.f32.mrf.mxu1 }
 0x229   :  { %1962 = vmatmul.msk.f32.vlgmr.msra.gmra.mxu3 %vm168_vm1, %v230_v28  ;;  %v323_v48 = vsel %vm168_vm1, %v320_v47, -inf }
 0x22a   :  { %1973 = vmatpush.xpose.msk.msra.mxu3 %vm168_vm1, %v505_v36  ;;  %324 = vmax.xlane.f32.xlu2 %v323_v48  ;;  %v634_v54 = vpop.permute.xlu0 %633 }
 0x230   :  { %v465_v50 = vpop.f32.mrf.mxu1 }
 0x231   :  { %1968 = vmatmul.msk.f32.vlgmr.msrb.gmra.mxu3 %vm168_vm1, %v361_v43  ;;  %v468_v51 = vsel %vm168_vm1, %v465_v50, -inf }
 0x232   :  { %469 = vmax.xlane.f32.xlu2 %v468_v51  ;;  %1979 = vmatpush.xpose.msk.msrb.mxu3 %vm168_vm1, %v636_v49 }
 0x238   :  { %v2457_v52 = vpop.f32.mrf.mxu1 }
 0x239   :  { %1974 = vmatmul.msk.f32.vlgmr.msra.gmra.mxu3 %vm168_vm1, %v503_v46  ;;  %v596_v53 = vsel %vm168_vm1, %v2457_v52, -inf }
 0x23a   :  { %597 = vmax.xlane.f32.xlu0 %v596_v53 }
 0x241   :  { %1980 = vmatmul.msk.f32.vlgmr.msrb.gmra.mxu3 %vm168_vm1, %v634_v54 }
 0x29d   :  { %v325_v55 = vpop.xlane.xlu2 %324 }
 0x29e   :  { %v326_v56 = vsub.f32 %v320_v47, %v325_v55 }
 0x2a0   :  { %v327_v57 = vmul.f32 1.442695, %v326_v56 }
 0x2a2   :  { %2101 = vpow2.f32 %v327_v57 }
 0x2a4   :  { %v2463_v58 = vpop.f32.mrf.mxu3 }
 0x2a5   :  { %v470_v60 = vpop.xlane.xlu2 %469 }
 0x2a6   :  { %v471_v62 = vsub.f32 %v465_v50, %v470_v60 }
 0x2a8   :  { %v2465_v59 = vpop.eup %2101  ;;  %v472_v1 = vmul.f32 1.442695, %v471_v62 }
 0x2a9   :  { %v329_v61 = vsel %vm168_vm1, %v2465_v59, 0.0 }
 0x2aa   :  { %330 = vadd.xlane.f32.xlu0 %v329_v61  ;;  %2103 = vpow2.f32 %v472_v1 }
 0x2ac   :  { %v254_v63 = vpop.f32.mrf.mxu3 }
 0x2ad   :  { %v257_v0 = vsel %vm168_vm1, %v254_v63, -inf  ;;  %v598_v12 = vpop.xlane.xlu0 %597 }
 0x2ae   :  { %258 = vmax.xlane.f32.xlu1 %v257_v0  ;;  %v599_v33 = vsub.f32 %v2457_v52, %v598_v12  ;;  %v716_v12 = vld [vmem:[%s2894_s7 + $0x18] sm:$0xff] }
 0x2af   :  { %739 = vmatpush.msrb.mxu1 %v716_v12 }
 0x2b0   :  { %v2471_v5 = vpop.eup %2103  ;;  %v600_v35 = vmul.f32 1.442695, %v599_v33 }
 0x2b1   :  { %v474_v8 = vsel %vm168_vm1, %v2471_v5, 0.0 }
 0x2b4   :  { %v385_v2 = vpop.f32.mrf.mxu3 }
 0x2b5   :  { %v388_v3 = vsel %vm168_vm1, %v385_v2, -inf }
 0x2b6   :  { %389 = vmax.xlane.f32.xlu0 %v388_v3 }
 0x2bc   :  { %v527_v6 = vpop.f32.mrf.mxu3 }
 0x2bd   :  { %v530_v9 = vsel %vm168_vm1, %v527_v6, -inf }
 0x2be   :  { %475 = vadd.xlane.f32.xlu0 %v474_v8  ;;  %531 = vmax.xlane.f32.xlu1 %v530_v9 }
 0x2c4   :  { %v658_v10 = vpop.f32.mrf.mxu3 }
 0x2c5   :  { %v661_v11 = vsel %vm168_vm1, %v658_v10, -inf }
 0x2c6   :  { %662 = vmax.xlane.f32.xlu2 %v661_v11 }
 0x2d2   :  { %399 = vrot.lane.b32.xlu0 %v2435_v26, %s2913_s29 }
 0x31d   :  { %v331_v13 = vpop.xlane.xlu0 %330 }
 0x321   :  { %v259_v14 = vpop.xlane.xlu1 %258 }
 0x322   :  { %v260_v15 = vsub.f32 %v254_v63, %v259_v14  ;;  %v714_v14 = vld [vmem:[%s2894_s7 + $0x8] sm:$0xff] }
 0x324   :  { %v261_v16 = vmul.f32 1.442695, %v260_v15  ;;  %v713_v15 = vld [vmem:[%s2894_s7] sm:$0xff] }
 0x326   :  { %2105 = vpow2.f32 %v261_v16 }
 0x329   :  { %v390_v17 = vpop.xlane.xlu0 %389 }
 0x32a   :  { %v391_v18 = vsub.f32 %v385_v2, %v390_v17 }
 0x32c   :  { %v2106_v19 = vpop.eup %2105  ;;  %v392_v20 = vmul.f32 1.442695, %v391_v18 }
 0x32d   :  { %v263_v21 = vsel %vm168_vm1, %v2106_v19, 0.0 }
 0x32e   :  { %2107 = vpow2.f32 %v392_v20  ;;  %264 = vadd.xlane.f32.xlu1 %v263_v21 }
 0x331   :  { %v532_v22 = vpop.xlane.xlu1 %531  ;;  %v476_v41 = vpop.xlane.xlu0 %475 }
 0x332   :  { %v533_v23 = vsub.f32 %v527_v6, %v532_v22 }
 0x334   :  { %v2108_v25 = vpop.eup %2107  ;;  %v534_v27 = vmul.f32 1.442695, %v533_v23 }
 0x335   :  { %v394_v28 = vsel %vm168_vm1, %v2108_v25, 0.0 }
 0x336   :  { %2109 = vpow2.f32 %v534_v27  ;;  %395 = vadd.xlane.f32.xlu2 %v394_v28 }
 0x337   :  { %2111 = vpow2.f32 %v600_v35 }
 0x339   :  { %v663_v34 = vpop.xlane.xlu2 %662 }
 0x33a   :  { %v664_v36 = vsub.f32 %v658_v10, %v663_v34 }
 0x33c   :  { %v2110_v29 = vpop.eup %2109  ;;  %v665_v37 = vmul.f32 1.442695, %v664_v36 }
 0x33d   :  { %v536_v30 = vsel %vm168_vm1, %v2110_v29, 0.0  ;;  %v2112_v38 = vpop.eup %2111 }
 0x33e   :  { %537 = vadd.xlane.f32.xlu0 %v536_v30  ;;  %2113 = vpow2.f32 %v665_v37  ;;  %v602_v39 = vsel %vm168_vm1, %v2112_v38, 0.0 }
 0x33f   :  { %2115 = vrcp.f32 %v331_v13  ;;  %v715_v13 = vld [vmem:[%s2894_s7 + $0x10] sm:$0xff] }
 0x340   :  { %2117 = vrcp.f32 %v476_v41  ;;  %740 = vmatpush.msrb.mxu1 %v715_v13 }
 0x342   :  { %741 = vmatpush.msrb.mxu1 %v714_v14 }
 0x344   :  { %v400_v46 = vpop.permute.xlu0 %399  ;;  %742 = vmatpush.msrb.mxu1 %v713_v15 }
 0x347   :  { %269 = vrot.lane.b32.xlu1 %v2435_v26, %s2239_s26 }
 0x34e   :  { %334 = vrot.lane.b32.xlu2 %v2435_v26, %s2921_s30  ;;  %v2114_v26 = vpop.eup %2113 }
 0x34f   :  { %v667_v24 = vsel %vm168_vm1, %v2114_v26, 0.0  ;;  %v2116_v43 = vpop.eup %2115 }
 0x350   :  { %v333_v45 = vmul.f32 %v2116_v43, %v2465_v59  ;;  %v2118_v47 = vpop.eup %2117 }
 0x351   :  { %v478_v49 = vmul.f32 %v2118_v47, %v2471_v5 }
 0x352   :  { %542 = vrot.lane.b32.xlu0 %v166_v32, %s2239_s26 }
 0x35a   :  { %607 = vrot.lane.b32.xlu0 %v166_v32, %s2921_s30 }
 0x362   :  { %672 = vrot.lane.b32.xlu0 %v166_v32, %s2913_s29 }
 0x371   :  { %603 = vadd.xlane.f32.xlu1 %v602_v39 }
 0x377   :  { %668 = vadd.xlane.f32.xlu2 %v667_v24 }
 0x3a1   :  { %v265_v42 = vpop.xlane.xlu1 %264 }
 0x3a2   :  { %2119 = vrcp.f32 %v265_v42 }
 0x3a8   :  { %v2120_v48 = vpop.eup %2119 }
 0x3a9   :  { %v396_v40 = vpop.xlane.xlu2 %395  ;;  %v267_v51 = vmul.f32 %v2120_v48, %v2106_v19 }
 0x3aa   :  { %2121 = vrcp.f32 %v396_v40 }
 0x3b0   :  { %v2122_v53 = vpop.eup %2121 }
 0x3b1   :  { %v335_v44 = vpop.permute.xlu2 %334  ;;  %v538_v52 = vpop.xlane.xlu0 %537  ;;  %v398_v54 = vmul.f32 %v2122_v53, %v2108_v25  ;;  %v816_v53 = vld [vmem:[%s2898_s11 + $0x8] sm:$0xff] }
 0x3b2   :  { %355 = vmatpush.msrb.mxu2 %v335_v44  ;;  %2123 = vrcp.f32 %v538_v52  ;;  %v817_v52 = vld [vmem:[%s2898_s11 + $0x10] sm:$0xff] }
 0x3b3   :  { %1966 = vmatmul.msk.f32.vlgmr.msrb.gmra.mxu2 %vm168_vm1, %v333_v45 }
 0x3b4   :  { %497 = vmatpush.msra.mxu2 %v166_v32 }
 0x3b8   :  { %v2124_v56 = vpop.eup %2123 }
 0x3b9   :  { %v270_v50 = vpop.permute.xlu1 %269  ;;  %v540_v57 = vmul.f32 %v2124_v56, %v2110_v29 }
 0x3ba   :  { %290 = vmatpush.msrb.mxu0 %v270_v50 }
 0x3bb   :  { %1963 = vmatmul.msk.f32.vlgmr.msrb.gmra.mxu0 %vm168_vm1, %v267_v51  ;;  %1972 = vmatmul.msk.f32.vlgmr.msra.gmra.mxu2 %vm168_vm1, %v478_v49  ;;  %v818_v51 = vld [vmem:[%s2898_s11 + $0x18] sm:$0xff] }
 0x3bc   :  { %420 = vmatpush.msra.mxu0 %v400_v46 }
 0x3c3   :  { %1969 = vmatmul.msk.f32.vlgmr.msra.gmra.mxu0 %vm168_vm1, %v398_v54  ;;  %v815_v54 = vld [vmem:[%s2898_s11] sm:$0xff] }
 0x3c4   :  { %v543_v55 = vpop.permute.xlu0 %542 }
 0x3c5   :  { %563 = vmatpush.msrb.mxu0 %v543_v55 }
 0x3cb   :  { %1975 = vmatmul.msk.f32.vlgmr.msrb.gmra.mxu0 %vm168_vm1, %v540_v57 }
 0x3cc   :  { %v608_v59 = vpop.permute.xlu0 %607 }
 0x3cd   :  { %628 = vmatpush.msrb.mxu2 %v608_v59 }
 0x3cf   :  { %841 = vmatpush.msra.mxu2 %v818_v51  ;;  %v2083_v51 = vld [vmem:[%s2901_s14] ss:$0 sm:$0xff] }
 0x3d1   :  { %842 = vmatpush.msra.mxu2 %v817_v52 }
 0x3d3   :  { %843 = vmatpush.msra.mxu2 %v816_v53 }
 0x3d4   :  { %v673_v60 = vpop.permute.xlu0 %672 }
 0x3d5   :  { %693 = vmatpush.msra.mxu0 %v673_v60  ;;  %844 = vmatpush.msra.mxu2 %v815_v54 }
 0x3e4   :  { %v604_v61 = vpop.xlane.xlu1 %603 }
 0x3e5   :  { %2125 = vrcp.f32 %v604_v61 }
 0x3ea   :  { %v669_v62 = vpop.xlane.xlu2 %668 }
 0x3eb   :  { %v2126_v63 = vpop.eup %2125  ;;  %2127 = vrcp.f32 %v669_v62 }
 0x3ec   :  { %v606_v0 = vmul.f32 %v2126_v63, %v2112_v38  ;;  %v2245_v38 = vmov 32.0  }
 0x3ed   :  { %2129 = vrcp.f32 %v2245_v38 }
 0x3ee   :  { %1978 = vmatmul.msk.f32.vlgmr.msrb.gmra.mxu2 %vm168_vm1, %v606_v0 }
 0x3f1   :  { %v2128_v1 = vpop.eup %2127 }
 0x3f2   :  { %v671_v2 = vmul.f32 %v2128_v1, %v2114_v26  ;;  %v2080_v1 = vld [vmem:[%s2896_s9] ss:$0 sm:$0xff] }
 0x3f3   :  { %v2130_v39 = vpop.eup %2129 }
 0x3f4   :  { %1981 = vmatmul.msk.f32.vlgmr.msra.gmra.mxu0 %vm168_vm1, %v671_v2  ;;  %v761_v26 = vmul.f32 32.0, %v2130_v39  ;;  %vm765_vm4 = vweird.f32 %v2130_v39 }
 0x3f6   :  { %v762_v24 = vsub.f32 1.0, %v761_v26 }
 0x3f8   :  { %v763_v40 = vmul.f32 %v2130_v39, %v762_v24 }
 0x3fa   :  { %v764_v41 = vadd.f32 %v2130_v39, %v763_v40 }
 0x3fc   :  { %v2536_v42 = vsel %vm765_vm4, %v2130_v39, %v764_v41 }
 0x436   :  { %v357_v3 = vpop.f32.mrf.mxu2 }
 0x437   :  { %430 = vrot.lane.b32.xlu1 %v357_v3, %s2917_s1 }
 0x438   :  { %v292_v5 = vpop.f32.mrf.mxu0 }
 0x439   :  { %426 = vrot.lane.b32.xlu0 %v292_v5, %s2915_s22  ;;  %v2081_v5 = vld [vmem:[%s2897_s10] ss:$0 sm:$0xff] }
 0x43e   :  { %v499_v9 = vpop.f32.mrf.mxu2 }
 0x440   :  { %v422_v6 = vpop.f32.mrf.mxu0 }
 0x441   :  { %434 = vrot.lane.b32.xlu0 %v422_v6, %s2919_s24 }
 0x448   :  { %v565_v8 = vpop.f32.mrf.mxu0 }
 0x449   :  { %699 = vrot.lane.b32.xlu2 %v565_v8, %s2915_s22 }
 0x471   :  { %v630_v10 = vpop.f32.mrf.mxu2  ;;  %v695_v11 = vpop.f32.mrf.mxu0 }
 0x472   :  { %703 = vrot.lane.b32.xlu0 %v630_v10, %s2917_s1 }
 0x47a   :  { %707 = vrot.lane.b32.xlu0 %v695_v11, %s2919_s24  ;;  %s2933_s24 = smov 112  }
 0x4a3   :  { %v700_v23 = vpop.permute.xlu2 %699 }
 0x4a4   :  { %v710_v25 = vsel %vm168_vm1, %v499_v9, %v700_v23  ;;  %v876_v23 = vld [vmem:[%s2900_s13 + $0x30] sm:$0xff] }
 0x4a9   :  { %v431_v18 = vpop.permute.xlu1 %430 }
 0x4ab   :  { %v427_v16 = vpop.permute.xlu0 %426 }
 0x4ac   :  { %v437_v17 = vsel %vm168_vm1, %v2463_v58, %v427_v16  ;;  %v2079_v58 = vld [vmem:[%s2895_s8] ss:$0 sm:$0xff] }
 0x4ad   :  { %v439_v19 = vsel %vm438_vm2, %v437_v17, %v431_v18 }
 0x4b3   :  { %v435_v20 = vpop.permute.xlu0 %434 }
 0x4b4   :  { %v441_v21 = vsel %vm440_vm3, %v439_v19, %v435_v20 }
 0x4b5   :  { %1982 = vmatmul.msk.f32.vlgmr.msrb.gmra.mxu1 %vm76_vm0, %v441_v21 }
 0x4e4   :  { %v704_v22 = vpop.permute.xlu0 %703 }
 0x4e5   :  { %v711_v27 = vsel %vm438_vm2, %v710_v25, %v704_v22  ;;  %v877_v22 = vld [vmem:[%s2900_s13 + $0x38] sm:$0xff]  ;;  %v875_v25 = vld [vmem:[%s2900_s13 + $0x28] sm:$0xff] }
 0x4e6   :  { %897 = vmatpush.msra.mxu3 %v877_v22 }
 0x4e8   :  { %898 = vmatpush.msra.mxu3 %v876_v23 }
 0x4ea   :  { %899 = vmatpush.msra.mxu3 %v875_v25 }
 0x4ec   :  { %v708_v28 = vpop.permute.xlu0 %707 }
 0x4ed   :  { %v712_v29 = vsel %vm440_vm3, %v711_v27, %v708_v28  ;;  %v874_v27 = vld [vmem:[%s2900_s13 + $0x20] sm:$0xff]  ;;  %v873_v28 = vld [vmem:[%s2900_s13 + $0x18] sm:$0xff] }
 0x4ee   :  { %1983 = vmatmul.msk.f32.gmra.mxu1 %vm76_vm0, %v712_v29  ;;  %900 = vmatpush.msra.mxu3 %v874_v27  ;;  %v872_v29 = vld [vmem:[%s2900_s13 + $0x10] sm:$0xff] }
 0x4f0   :  { %901 = vmatpush.msra.mxu3 %v873_v28 }
 0x4f2   :  { %902 = vmatpush.msra.mxu3 %v872_v29 }
 0x532   :  { %v744_v30 = vpop.f32.mrf.mxu1 }
 0x533   :  { %v745_v31 = vadd.f32 %v2079_v58, %v744_v30  ;;  %v870_v30 = vld [vmem:[%s2900_s13] sm:$0xff] }
 0x535   :  { %v750_v32 = vadd.f32 %v745_v31, %v2368_v4  ;;  %v2082_v31 = vld [vmem:[%s2899_s12] ss:$0 sm:$0xff] }
 0x537   :  { %v754_v33 = vsel %vm76_vm0, %v750_v32, 0.0 }
 0x538   :  { %755 = vadd.xlane.f32.xlu1 %v754_v33 }
 0x56b   :  { %v747_v34 = vpop.f32.mrf.mxu1 }
 0x56c   :  { %v748_v35 = vadd.f32 %v2079_v58, %v747_v34  ;;  %v871_v58 = vld [vmem:[%s2900_s13 + $0x8] sm:$0xff] }
 0x56d   :  { %903 = vmatpush.msra.mxu3 %v871_v58 }
 0x56e   :  { %v751_v36 = vadd.f32 %v748_v35, %v2379_v7 }
 0x56f   :  { %904 = vmatpush.msra.mxu3 %v870_v30 }
 0x570   :  { %v757_v37 = vsel %vm76_vm0, %v751_v36, 0.0 }
 0x571   :  { %758 = vadd.xlane.f32.xlu0 %v757_v37 }
 0x5ab   :  { %v756_v4 = vpop.xlane.xlu1 %755 }
 0x5ac   :  { %v767_v43 = vmul.f32 %v2536_v42, %v756_v4 }
 0x5ae   :  { %v769_v44 = vsub.f32 %v750_v32, %v767_v43 }
 0x5b0   :  { %v771_v45 = vmul.f32 %v769_v44, %v769_v44 }
 0x5b2   :  { %v773_v7 = vsel %vm76_vm0, %v771_v45, 0.0 }
 0x5b3   :  { %774 = vadd.xlane.f32.xlu2 %v773_v7 }
 0x5e4   :  { %v759_v46 = vpop.xlane.xlu0 %758 }
 0x5e5   :  { %v768_v47 = vmul.f32 %v2536_v42, %v759_v46 }
 0x5e7   :  { %v770_v48 = vsub.f32 %v751_v36, %v768_v47 }
 0x5e9   :  { %v772_v49 = vmul.f32 %v770_v48, %v770_v48 }
 0x5eb   :  { %v776_v50 = vsel %vm76_vm0, %v772_v49, 0.0 }
 0x5ec   :  { %777 = vadd.xlane.f32.xlu1 %v776_v50 }
 0x626   :  { %v775_v55 = vpop.xlane.xlu2 %774 }
 0x627   :  { %v779_v56 = vmul.f32 %v775_v55, %v2536_v42 }
 0x629   :  { %v781_v57 = vadd.f32 1e-05, %v779_v56 }
 0x62b   :  { %2131 = vrsqrt.f32 %v781_v57  ;;  %vm789_vm6 = vweird.f32 %v781_v57 }
 0x631   :  { %v2132_v59 = vpop.eup %2131 }
 0x632   :  { %v784_v60 = vmul.f32 %v2132_v59, %v781_v57  ;;  %vm790_vm5 = vweird.f32 %v2132_v59 }
 0x633   :  { %vm791_vm7 = vmor %vm789_vm6, %vm790_vm5 }
 0x634   :  { %v785_v61 = vmul.f32 %v2132_v59, %v784_v60 }
 0x636   :  { %v786_v62 = vmul.f32 0.5, %v785_v61 }
 0x638   :  { %v787_v63 = vsub.f32 1.5, %v786_v62 }
 0x63a   :  { %v788_v0 = vmul.f32 %v2132_v59, %v787_v63 }
 0x63c   :  { %v792_v2 = vsel %vm791_vm7, %v2132_v59, %v788_v0 }
 0x63d   :  { %v803_v3 = vmul.f32 %v792_v2, %v769_v44 }
 0x63f   :  { %v808_v6 = vmul.f32 %v2080_v1, %v803_v3 }
 0x641   :  { %v2561_v8 = vadd.f32 %v2081_v5, %v808_v6 }
 0x643   :  { %1984 = vmatmul.msk.f32.vlgmr.msra.gmra.mxu2 %vm76_vm0, %v2561_v8 }
 0x65f   :  { %v778_v9 = vpop.xlane.xlu1 %777 }
 0x660   :  { %v780_v10 = vmul.f32 %v778_v9, %v2536_v42  ;;  %v1991_v9 = vld [vmem:[%s2928_s23 + $0x38] sm:$0xff] }
 0x661   :  { %998 = vmatpush.msrb.mxu0 %v1991_v9 }
 0x662   :  { %v782_v11 = vadd.f32 1e-05, %v780_v10  ;;  %v1998_v10 = vld [vmem:[%s2930_s3 + $0x38] sm:$0xff] }
 0x663   :  { %1031 = vmatpush.msra.mxu1 %v1998_v10 }
 0x664   :  { %2133 = vrsqrt.f32 %v782_v11  ;;  %vm799_vm9 = vweird.f32 %v782_v11 }
 0x66a   :  { %v2134_v12 = vpop.eup %2133 }
 0x66b   :  { %v794_v13 = vmul.f32 %v2134_v12, %v782_v11  ;;  %vm800_vm8 = vweird.f32 %v2134_v12  ;;  %v2005_v11 = vld [vmem:[%s2892_s5 + $0x38] sm:$0xff] }
 0x66c   :  { %vm801_vm10 = vmor %vm799_vm9, %vm800_vm8  ;;  %1064 = vmatpush.msrb.mxu2 %v2005_v11 }
 0x66d   :  { %v795_v14 = vmul.f32 %v2134_v12, %v794_v13  ;;  %v1997_v13 = vld [vmem:[%s2930_s3 + $0x30] sm:$0xff] }
 0x66e   :  { %1032 = vmatpush.msra.mxu1 %v1997_v13 }
 0x66f   :  { %v796_v15 = vmul.f32 0.5, %v795_v14  ;;  %v2004_v14 = vld [vmem:[%s2892_s5 + $0x30] sm:$0xff] }
 0x670   :  { %1065 = vmatpush.msrb.mxu2 %v2004_v14 }
 0x671   :  { %v797_v16 = vsub.f32 1.5, %v796_v15  ;;  %v1989_v15 = vld [vmem:[%s2928_s23 + $0x28] sm:$0xff] }
 0x673   :  { %v798_v17 = vmul.f32 %v2134_v12, %v797_v16  ;;  %v1996_v16 = vld [vmem:[%s2930_s3 + $0x28] sm:$0xff] }
 0x674   :  { %1033 = vmatpush.msra.mxu1 %v1996_v16 }
 0x675   :  { %v802_v18 = vsel %vm801_vm10, %v2134_v12, %v798_v17  ;;  %v1990_v12 = vld [vmem:[%s2928_s23 + $0x30] sm:$0xff]  ;;  %v2003_v17 = vld [vmem:[%s2892_s5 + $0x28] sm:$0xff] }
 0x676   :  { %v804_v19 = vmul.f32 %v802_v18, %v770_v48  ;;  %999 = vmatpush.msrb.mxu0 %v1990_v12  ;;  %v1988_v18 = vld [vmem:[%s2928_s23 + $0x20] sm:$0xff]  ;;  %1066 = vmatpush.msrb.mxu2 %v2003_v17 }
 0x678   :  { %v809_v20 = vmul.f32 %v2080_v1, %v804_v19  ;;  %v1995_v19 = vld [vmem:[%s2930_s3 + $0x20] sm:$0xff]  ;;  %1000 = vmatpush.msrb.mxu0 %v1989_v15 }
 0x679   :  { %1034 = vmatpush.msra.mxu1 %v1995_v19 }
 0x67a   :  { %v814_v21 = vadd.f32 %v2081_v5, %v809_v20  ;;  %v2002_v20 = vld [vmem:[%s2892_s5 + $0x20] sm:$0xff]  ;;  %1001 = vmatpush.msrb.mxu0 %v1988_v18 }
 0x67b   :  { %1067 = vmatpush.msrb.mxu2 %v2002_v20 }
 0x67c   :  { %1985 = vmatmul.msk.f32.gmra.mxu2 %vm76_vm0, %v814_v21 }
 0x6c6   :  { %v846_v32 = vpop.f32.mrf.mxu2 }
 0x6c7   :  { %v847_v33 = vadd.f32 %v2082_v31, %v846_v32 }
 0x6c9   :  { %v852_v34 = vmul.f32 %v847_v33, %v847_v33 }
 0x6cb   :  { %v854_v35 = vmul.f32 %v852_v34, %v847_v33  ;;  %v2085_v34 = vld [vmem:[%s2903_s16] ss:$0 sm:$0xff] }
 0x6cd   :  { %v856_v36 = vmul.f32 0.044715, %v854_v35 }
 0x6cf   :  { %v858_v37 = vadd.f32 %v856_v36, %v847_v33 }
 0x6d1   :  { %v860_v38 = vmul.f32 0.7978846, %v858_v37 }
 0x6d3   :  { %2135 = vtanh.f32 %v860_v38 }
 0x6d9   :  { %v2136_v39 = vpop.eup %2135 }
 0x6da   :  { %v864_v26 = vadd.f32 1.0, %v2136_v39 }
 0x6dc   :  { %v866_v24 = vmul.f32 0.5, %v864_v26 }
 0x6de   :  { %v868_v40 = vmul.f32 %v866_v24, %v847_v33 }
 0x6e0   :  { %1986 = vmatmul.msk.f32.vlgmr.msra.gmra.mxu3 %vm882_vm11, %v868_v40 }
 0x6ff   :  { %v849_v41 = vpop.f32.mrf.mxu2 }
 0x700   :  { %v850_v4 = vadd.f32 %v2082_v31, %v849_v41  ;;  %v2084_v31 = vld [vmem:[%s2902_s15] ss:$0 sm:$0xff] }
 0x702   :  { %v853_v43 = vmul.f32 %v850_v4, %v850_v4 }
 0x704   :  { %v855_v44 = vmul.f32 %v853_v43, %v850_v4 }
 0x706   :  { %v857_v45 = vmul.f32 0.044715, %v855_v44 }
 0x708   :  { %v859_v7 = vadd.f32 %v857_v45, %v850_v4 }
 0x70a   :  { %v861_v46 = vmul.f32 0.7978846, %v859_v7 }
 0x70c   :  { %2137 = vtanh.f32 %v861_v46 }
 0x712   :  { %v2138_v47 = vpop.eup %2137 }
 0x713   :  { %v865_v48 = vadd.f32 1.0, %v2138_v47  ;;  %v2086_v47 = vld [vmem:[%s2931_s25 + $0x1] ss:$0 sm:$0xff]  ;;  %s2934_s25 = smov 104  }
 0x715   :  { %v867_v49 = vmul.f32 0.5, %v865_v48  ;;  %v2087_v48 = vld [vmem:[%s2932_s4 + $0x1] ss:$0 sm:$0xff]  ;;  %s2937_s4 = smov 16  }
 0x717   :  { %v869_v50 = vmul.f32 %v867_v49, %v850_v4 }
 0x719   :  { %1987 = vmatmul.msk.f32.gmra.mxu3 %vm882_vm11, %v869_v50 }
 0x763   :  { %v906_v52 = vpop.f32.mrf.mxu3 }
 0x764   :  { %v907_v53 = vadd.f32 %v2083_v51, %v906_v52 }
 0x766   :  { %v912_v54 = vadd.f32 %v907_v53, %v2561_v8  ;;  %v2684_v53 = vld [vmem:[%s2893_s6 + $0x1] ss:$0 sm:$0xff]  ;;  %s2935_s6 = smov 8  }
 0x768   :  { %v916_v55 = vsel %vm76_vm0, %v912_v54, 0.0 }
 0x769   :  { %917 = vadd.xlane.f32.xlu2 %v916_v55 }
 0x79c   :  { %v909_v56 = vpop.f32.mrf.mxu3 }
 0x79d   :  { %v910_v57 = vadd.f32 %v2083_v51, %v909_v56 }
 0x79f   :  { %v913_v59 = vadd.f32 %v910_v57, %v814_v21 }
 0x7a1   :  { %v919_v60 = vsel %vm76_vm0, %v913_v59, 0.0 }
 0x7a2   :  { %920 = vadd.xlane.f32.xlu0 %v919_v60 }
 0x7dc   :  { %v918_v61 = vpop.xlane.xlu2 %917 }
 0x7dd   :  { %v922_v62 = vmul.f32 %v918_v61, %v2536_v42 }
 0x7df   :  { %v924_v63 = vsub.f32 %v912_v54, %v922_v62 }
 0x7e1   :  { %v926_v0 = vmul.f32 %v924_v63, %v924_v63 }
 0x7e3   :  { %v928_v1 = vsel %vm76_vm0, %v926_v0, 0.0 }
 0x7e4   :  { %929 = vadd.xlane.f32.xlu1 %v928_v1 }
 0x815   :  { %v921_v2 = vpop.xlane.xlu0 %920 }
 0x816   :  { %v923_v3 = vmul.f32 %v921_v2, %v2536_v42 }
 0x818   :  { %v2605_v5 = vsub.f32 %v913_v59, %v923_v3 }
 0x81a   :  { %v927_v6 = vmul.f32 %v2605_v5, %v2605_v5 }
 0x81c   :  { %v931_v8 = vsel %vm76_vm0, %v927_v6, 0.0 }
 0x81d   :  { %932 = vadd.xlane.f32.xlu2 %v931_v8 }
 0x857   :  { %v930_v21 = vpop.xlane.xlu1 %929 }
 0x858   :  { %v934_v22 = vmul.f32 %v930_v21, %v2536_v42 }
 0x85a   :  { %v936_v23 = vadd.f32 1e-05, %v934_v22 }
 0x85c   :  { %2139 = vrsqrt.f32 %v936_v23  ;;  %vm944_vm13 = vweird.f32 %v936_v23 }
 0x862   :  { %v2140_v25 = vpop.eup %2139 }
 0x863   :  { %v939_v27 = vmul.f32 %v2140_v25, %v936_v23  ;;  %vm945_vm12 = vweird.f32 %v2140_v25 }
 0x864   :  { %vm946_vm14 = vmor %vm944_vm13, %vm945_vm12 }
 0x865   :  { %v940_v28 = vmul.f32 %v2140_v25, %v939_v27 }
 0x867   :  { %v941_v29 = vmul.f32 0.5, %v940_v28 }
 0x869   :  { %v942_v58 = vsub.f32 1.5, %v941_v29 }
 0x86b   :  { %v943_v30 = vmul.f32 %v2140_v25, %v942_v58 }
 0x86d   :  { %v947_v32 = vsel %vm946_vm14, %v2140_v25, %v943_v30 }
 0x86e   :  { %v958_v33 = vmul.f32 %v947_v32, %v924_v63 }
 0x870   :  { %v963_v35 = vmul.f32 %v2084_v31, %v958_v33 }
 0x872   :  { %v2653_v36 = vadd.f32 %v2085_v34, %v963_v35 }
 0x874   :  { %1993 = vmatmul.msk.f32.vlgmr.msrb.gmra.mxu0 %vm76_vm0, %v2653_v36  ;;  %2000 = vmatmul.msk.f32.vlgmr.msra.gmra.mxu1 %vm76_vm0, %v2653_v36 }
 0x875   :  { %2007 = vmatmul.msk.f32.vlgmr.msrb.gmra.mxu2 %vm76_vm0, %v2653_v36 }
 0x890   :  { %v933_v37 = vpop.xlane.xlu2 %932 }
 0x891   :  { %v935_v38 = vmul.f32 %v933_v37, %v2536_v42 }
 0x893   :  { %v937_v39 = vadd.f32 1e-05, %v935_v38 }
 0x895   :  { %2141 = vrsqrt.f32 %v937_v39  ;;  %vm954_vm4 = vweird.f32 %v937_v39 }
 0x89b   :  { %v2142_v26 = vpop.eup %2141 }
 0x89c   :  { %v949_v24 = vmul.f32 %v2142_v26, %v937_v39  ;;  %vm955_vm15 = vweird.f32 %v2142_v26 }
 0x89d   :  { %vm956_vm5 = vmor %vm954_vm4, %vm955_vm15  ;;  %vm1879_vm15 = vcmask 1040384   ;;  %vm1912_vm4 = vcmask 123904  }
 0x89e   :  { %v950_v40 = vmul.f32 %v2142_v26, %v949_v24 }
 0x8a0   :  { %v951_v41 = vmul.f32 0.5, %v950_v40 }
 0x8a2   :  { %v952_v4 = vsub.f32 1.5, %v951_v41 }
 0x8a4   :  { %v953_v43 = vmul.f32 %v2142_v26, %v952_v4 }
 0x8a6   :  { %v957_v44 = vsel %vm956_vm5, %v2142_v26, %v953_v43 }
 0x8a7   :  { %v959_v45 = vmul.f32 %v957_v44, %v2605_v5 }
 0x8a9   :  { %v964_v7 = vmul.f32 %v2084_v31, %v959_v45 }
 0x8ab   :  { %v2663_v46 = vadd.f32 %v2085_v34, %v964_v7 }
 0x8ad   :  { %1994 = vmatmul.msk.f32.gmra.mxu0 %vm76_vm0, %v2663_v46  ;;  %2001 = vmatmul.msk.f32.gmra.mxu1 %vm76_vm0, %v2663_v46 }
 0x8ae   :  { %2008 = vmatmul.msk.f32.gmra.mxu2 %vm76_vm0, %v2663_v46 }
 0x8f1   :  { %v1003_v49 = vpop.f32.mrf.mxu0  ;;  %v1036_v50 = vpop.f32.mrf.mxu1 }
 0x8f2   :  { %v1004_v51 = vadd.f32 %v2086_v47, %v1003_v49  ;;  %v1037_v52 = vadd.f32 %v2087_v48, %v1036_v50 }
 0x8f4   :  { %1137 = vrot.lane.b32.xlu2 %v1037_v52, %s2239_s26  ;;  %1203 = vrot.lane.b32.xlu0 %v1037_v52, %s2933_s24 }
 0x8f5   :  { %2009 = vmatpush.xpose.msk.msra.mxu0 %vm168_vm1, %v1037_v52  ;;  %1201 = vrot.lane.b32.xlu1 %v1004_v51, %s2933_s24 }
 0x8f8   :  { %v1069_v54 = vpop.f32.mrf.mxu2  ;;  %2010 = vmatmul.msk.f32.vlgmr.msra.gmra.mxu0 %vm168_vm1, %v1004_v51 }
 0x8f9   :  { %v2688_v55 = vadd.f32 %v2684_v53, %v1069_v54 }
 0x8fb   :  { %1130 = vmatpush.msrb.mxu3 %v2688_v55 }
 0x8fc   :  { %1135 = vrot.lane.b32.xlu0 %v1004_v51, %s2239_s26 }
 0x8fd   :  { %1266 = vrot.lane.b32.xlu1 %v1004_v51, %s2934_s25 }
 0x904   :  { %1268 = vrot.lane.b32.xlu0 %v1037_v52, %s2934_s25 }
 0x92a   :  { %v1006_v56 = vpop.f32.mrf.mxu0  ;;  %v1039_v57 = vpop.f32.mrf.mxu1 }
 0x92b   :  { %v1007_v59 = vadd.f32 %v2086_v47, %v1006_v56  ;;  %v1040_v60 = vadd.f32 %v2087_v48, %v1039_v57 }
 0x92d   :  { %1474 = vrot.lane.b32.xlu2 %v1040_v60, %s2933_s24  ;;  %1472 = vrot.lane.b32.xlu0 %v1007_v59, %s2933_s24 }
 0x92e   :  { %1408 = vrot.lane.b32.xlu1 %v1040_v60, %s2239_s26 }
 0x931   :  { %v2715_v13 = vpop.f32.mrf.mxu2 }
 0x935   :  { %1406 = vrot.lane.b32.xlu2 %v1007_v59, %s2239_s26  ;;  %1539 = vrot.lane.b32.xlu0 %v1040_v60, %s2934_s25 }
 0x936   :  { %1537 = vrot.lane.b32.xlu1 %v1007_v59, %s2934_s25 }
 0x94e   :  { %v1138_v61 = vpop.permute.xlu2 %1137 }
 0x94f   :  { %2012 = vmatpush.xpose.msk.msrb.mxu0 %vm168_vm1, %v1138_v61 }
 0x966   :  { %v1204_v62 = vpop.permute.xlu0 %1203 }
 0x967   :  { %2015 = vmatpush.xpose.msk.msra.mxu2 %vm168_vm1, %v1204_v62  ;;  %v1202_v63 = vpop.permute.xlu1 %1201 }
 0x96a   :  { %2016 = vmatmul.msk.f32.vlgmr.msra.gmra.mxu2 %vm168_vm1, %v1202_v63 }
 0x96b   :  { %2021 = vmatpush.xpose.msk.msrb.mxu2 %vm168_vm1, %v1040_v60 }
 0x96e   :  { %v1136_v0 = vpop.permute.xlu0 %1135 }
 0x96f   :  { %2013 = vmatmul.msk.f32.vlgmr.msrb.gmra.mxu0 %vm168_vm1, %v1136_v0  ;;  %v1267_v5 = vpop.permute.xlu1 %1266 }
 0x972   :  { %2022 = vmatmul.msk.f32.vlgmr.msrb.gmra.mxu2 %vm168_vm1, %v1007_v59 }
 0x975   :  { %v1098_v1 = vpop.f32.mrf.mxu0 }
 0x976   :  { %v1269_v2 = vpop.permute.xlu0 %1268  ;;  %v1101_v3 = vsel %vm168_vm1, %v1098_v1, -inf }
 0x977   :  { %1102 = vmax.xlane.f32.xlu2 %v1101_v3  ;;  %2018 = vmatpush.xpose.msk.msra.mxu0 %vm168_vm1, %v1269_v2 }
 0x97a   :  { %2019 = vmatmul.msk.f32.vlgmr.msra.gmra.mxu0 %vm168_vm1, %v1267_v5 }
 0x987   :  { %v1475_v6 = vpop.permute.xlu2 %1474 }
 0x988   :  { %2027 = vmatpush.xpose.msk.msra.mxu2 %vm168_vm1, %v1475_v6 }
 0x98f   :  { %v1407_v10 = vpop.permute.xlu2 %1406 }
 0x99f   :  { %v1473_v8 = vpop.permute.xlu0 %1472 }
 0x9a0   :  { %v1409_v9 = vpop.permute.xlu1 %1408  ;;  %2028 = vmatmul.msk.f32.vlgmr.msra.gmra.mxu2 %vm168_vm1, %v1473_v8 }
 0x9a1   :  { %2024 = vmatpush.xpose.msk.msrb.mxu0 %vm168_vm1, %v1409_v9 }
 0x9a4   :  { %2025 = vmatmul.msk.f32.vlgmr.msrb.gmra.mxu0 %vm168_vm1, %v1407_v10 }
 0x9a7   :  { %v1540_v11 = vpop.permute.xlu0 %1539 }
 0x9a8   :  { %2030 = vmatpush.xpose.msk.msra.mxu0 %vm168_vm1, %v1540_v11  ;;  %v1538_v12 = vpop.permute.xlu1 %1537  ;;  %v1073_v11 = vadd.f32 %v2684_v53, %v2715_v13 }
 0x9ac   :  { %2031 = vmatmul.msk.f32.vlgmr.msra.gmra.mxu0 %vm168_vm1, %v1538_v12 }
 0x9ea   :  { %v1103_v14 = vpop.xlane.xlu2 %1102 }
 0x9eb   :  { %v1104_v15 = vsub.f32 %v1098_v1, %v1103_v14 }
 0x9ec   :  { %v1160_v16 = vpop.f32.mrf.mxu0 }
 0x9ed   :  { %v1105_v17 = vmul.f32 1.442695, %v1104_v15  ;;  %v1226_v18 = vpop.f32.mrf.mxu2  ;;  %v1163_v19 = vsel %vm168_vm1, %v1160_v16, -inf }
 0x9ee   :  { %1164 = vmax.xlane.f32.xlu0 %v1163_v19  ;;  %v1229_v20 = vsel %vm168_vm1, %v1226_v18, -inf }
 0x9ef   :  { %2143 = vpow2.f32 %v1105_v17  ;;  %1230 = vmax.xlane.f32.xlu1 %v1229_v20 }
 0x9f5   :  { %v2144_v21 = vpop.eup %2143  ;;  %v1369_v22 = vpop.f32.mrf.mxu2 }
 0x9f6   :  { %v1372_v23 = vsel %vm168_vm1, %v1369_v22, -inf  ;;  %v1107_v25 = vsel %vm168_vm1, %v2144_v21, 0.0 }
 0x9f7   :  { %v1291_v27 = vpop.f32.mrf.mxu0  ;;  %1373 = vmax.xlane.f32.xlu0 %v1372_v23  ;;  %1108 = vadd.xlane.f32.xlu1 %v1107_v25 }
 0x9f8   :  { %v1294_v28 = vsel %vm168_vm1, %v1291_v27, -inf }
 0x9f9   :  { %1295 = vmax.xlane.f32.xlu2 %v1294_v28 }
 0xa21   :  { %v1431_v29 = vpop.f32.mrf.mxu0 }
 0xa22   :  { %v1434_v58 = vsel %vm168_vm1, %v1431_v29, -inf }
 0xa23   :  { %1435 = vmax.xlane.f32.xlu1 %v1434_v58  ;;  %v1497_v30 = vpop.f32.mrf.mxu2 }
 0xa24   :  { %v1500_v31 = vsel %vm168_vm1, %v1497_v30, -inf }
 0xa25   :  { %1501 = vmax.xlane.f32.xlu2 %v1500_v31 }
 0xa29   :  { %v1562_v32 = vpop.f32.mrf.mxu0 }
 0xa2a   :  { %v1565_v33 = vsel %vm168_vm1, %v1562_v32, -inf }
 0xa2b   :  { %1566 = vmax.xlane.f32.xlu0 %v1565_v33 }
 0xa61   :  { %v1165_v34 = vpop.xlane.xlu0 %1164 }
 0xa62   :  { %v1166_v35 = vsub.f32 %v1160_v16, %v1165_v34  ;;  %v1231_v37 = vpop.xlane.xlu1 %1230 }
 0xa63   :  { %v1232_v38 = vsub.f32 %v1226_v18, %v1231_v37 }
 0xa64   :  { %v1167_v39 = vmul.f32 1.442695, %v1166_v35 }
 0xa65   :  { %v1233_v26 = vmul.f32 1.442695, %v1232_v38 }
 0xa66   :  { %2145 = vpow2.f32 %v1167_v39 }
 0xa67   :  { %2147 = vpow2.f32 %v1233_v26 }
 0xa6a   :  { %v1109_v24 = vpop.xlane.xlu1 %1108  ;;  %v1374_v51 = vpop.xlane.xlu0 %1373 }
 0xa6b   :  { %2149 = vrcp.f32 %v1109_v24  ;;  %v1375_v54 = vsub.f32 %v1369_v22, %v1374_v51 }
 0xa6c   :  { %v2146_v40 = vpop.eup %2145  ;;  %v1296_v41 = vpop.xlane.xlu2 %1295 }
 0xa6d   :  { %v2725_v4 = vpop.eup %2147  ;;  %v1297_v43 = vsub.f32 %v1291_v27, %v1296_v41  ;;  %v1169_v44 = vsel %vm168_vm1, %v2146_v40, 0.0  ;;  %v1376_v57 = vmul.f32 1.442695, %v1375_v54 }
 0xa6e   :  { %1170 = vadd.xlane.f32.xlu2 %v1169_v44  ;;  %v1235_v45 = vsel %vm168_vm1, %v2725_v4, 0.0  ;;  %v2036_v44 = vld [vmem:[%s2894_s7 + $0x38] sm:$0xff] }
 0xa6f   :  { %v1298_v7 = vmul.f32 1.442695, %v1297_v43  ;;  %1236 = vadd.xlane.f32.xlu0 %v1235_v45  ;;  %v2035_v45 = vld [vmem:[%s2894_s7 + $0x30] sm:$0xff]  ;;  %1645 = vmatpush.msrb.mxu2 %v2036_v44 }
 0xa71   :  { %v2150_v47 = vpop.eup %2149  ;;  %2151 = vpow2.f32 %v1298_v7  ;;  %1646 = vmatpush.msrb.mxu2 %v2035_v45 }
 0xa72   :  { %v1111_v48 = vmul.f32 %v2150_v47, %v2144_v21  ;;  %2153 = vpow2.f32 %v1376_v57  ;;  %v2034_v47 = vld [vmem:[%s2894_s7 + $0x28] sm:$0xff] }
 0xa73   :  { %1647 = vmatpush.msrb.mxu2 %v2034_v47 }
 0xa74   :  { %2011 = vmatmul.msk.f32.vlgmr.msrb.gmra.mxu3 %vm168_vm1, %v1111_v48 }
 0xa77   :  { %v2152_v49 = vpop.eup %2151 }
 0xa78   :  { %v1300_v50 = vsel %vm168_vm1, %v2152_v49, 0.0  ;;  %v2154_v0 = vpop.eup %2153 }
 0xa79   :  { %1301 = vadd.xlane.f32.xlu1 %v1300_v50  ;;  %v1378_v3 = vsel %vm168_vm1, %v2154_v0, 0.0 }
 0xa83   :  { %1305 = vrot.lane.b32.xlu0 %v2688_v55, %s2934_s25 }
 0xa86   :  { %1175 = vrot.lane.b32.xlu2 %v2688_v55, %s2239_s26 }
 0xa92   :  { %1240 = vrot.lane.b32.xlu1 %v2688_v55, %s2933_s24 }
 0xa96   :  { %v1436_v59 = vpop.xlane.xlu1 %1435 }
 0xa97   :  { %v1437_v61 = vsub.f32 %v1431_v29, %v1436_v59 }
 0xa98   :  { %v1502_v52 = vpop.xlane.xlu2 %1501 }
 0xa99   :  { %v1503_v56 = vsub.f32 %v1497_v30, %v1502_v52  ;;  %v1438_v62 = vmul.f32 1.442695, %v1437_v61 }
 0xa9b   :  { %v1504_v60 = vmul.f32 1.442695, %v1503_v56 }
 0xa9d   :  { %2155 = vpow2.f32 %v1504_v60 }
 0xa9e   :  { %v1567_v63 = vpop.xlane.xlu0 %1566  ;;  %2157 = vpow2.f32 %v1438_v62 }
 0xa9f   :  { %v1568_v1 = vsub.f32 %v1562_v32, %v1567_v63 }
 0xaa1   :  { %v1569_v55 = vmul.f32 1.442695, %v1568_v1  ;;  %v2089_v1 = vld [vmem:[%s2895_s8 + $0x1] ss:$0 sm:$0xff] }
 0xaa3   :  { %v2156_v2 = vpop.eup %2155  ;;  %2159 = vpow2.f32 %v1569_v55 }
 0xaa4   :  { %v1506_v5 = vsel %vm168_vm1, %v2156_v2, 0.0  ;;  %v2158_v6 = vpop.eup %2157 }
 0xaa5   :  { %v1440_v8 = vsel %vm168_vm1, %v2158_v6, 0.0 }
 0xaa9   :  { %v2160_v9 = vpop.eup %2159 }
 0xaaa   :  { %v1571_v10 = vsel %vm168_vm1, %v2160_v9, 0.0 }
 0xaad   :  { %1379 = vadd.xlane.f32.xlu0 %v1378_v3 }
 0xaaf   :  { %1507 = vadd.xlane.f32.xlu2 %v1506_v5 }
 0xab5   :  { %1441 = vadd.xlane.f32.xlu0 %v1440_v8 }
 0xabc   :  { %1572 = vadd.xlane.f32.xlu1 %v1571_v10 }
 0xac9   :  { %1446 = vrot.lane.b32.xlu0 %v1073_v11, %s2239_s26  ;;  %s2936_s26 = smov 24  }
 0xad1   :  { %1511 = vrot.lane.b32.xlu0 %v1073_v11, %s2933_s24 }
 0xad9   :  { %1576 = vrot.lane.b32.xlu0 %v1073_v11, %s2934_s25 }
 0xae1   :  { %v1171_v12 = vpop.xlane.xlu2 %1170 }
 0xae2   :  { %2161 = vrcp.f32 %v1171_v12  ;;  %v1237_v18 = vpop.xlane.xlu0 %1236 }
 0xae8   :  { %v2162_v14 = vpop.eup %2161 }
 0xae9   :  { %v1173_v15 = vmul.f32 %v2162_v14, %v2146_v40  ;;  %v1176_v16 = vpop.permute.xlu2 %1175 }
 0xaea   :  { %1196 = vmatpush.msrb.mxu1 %v1176_v16 }
 0xaeb   :  { %2014 = vmatmul.msk.f32.vlgmr.msrb.gmra.mxu1 %vm168_vm1, %v1173_v15 }
 0xaec   :  { %v1302_v17 = vpop.xlane.xlu1 %1301 }
 0xaed   :  { %2163 = vrcp.f32 %v1302_v17 }
 0xaee   :  { %2165 = vrcp.f32 %v1237_v18 }
 0xaf3   :  { %v2164_v19 = vpop.eup %2163 }
 0xaf4   :  { %v1304_v20 = vmul.f32 %v2164_v19, %v2152_v49  ;;  %v2166_v13 = vpop.eup %2165  ;;  %v2033_v49 = vld [vmem:[%s2894_s7 + $0x20] sm:$0xff] }
 0xaf5   :  { %v1306_v53 = vpop.permute.xlu0 %1305  ;;  %v1239_v21 = vmul.f32 %v2166_v13, %v2725_v4  ;;  %1648 = vmatpush.msrb.mxu2 %v2033_v49  ;;  %v2043_v13 = vld [vmem:[%s2898_s11 + $0x28] sm:$0xff] }
 0xaf6   :  { %1326 = vmatpush.msra.mxu1 %v1306_v53  ;;  %v2044_v53 = vld [vmem:[%s2898_s11 + $0x30] sm:$0xff] }
 0xaf7   :  { %2020 = vmatmul.msk.f32.vlgmr.msra.gmra.mxu1 %vm168_vm1, %v1304_v20  ;;  %v1132_v40 = vpop.f32.mrf.mxu3 }
 0xb04   :  { %v1241_v22 = vpop.permute.xlu1 %1240 }
 0xb05   :  { %1261 = vmatpush.msra.mxu3 %v1241_v22 }
 0xb06   :  { %2017 = vmatmul.msk.f32.vlgmr.msra.gmra.mxu3 %vm168_vm1, %v1239_v21  ;;  %v2042_v21 = vld [vmem:[%s2898_s11 + $0x20] sm:$0xff] }
 0xb07   :  { %1401 = vmatpush.msrb.mxu3 %v1073_v11 }
 0xb20   :  { %v1380_v23 = vpop.xlane.xlu0 %1379 }
 0xb21   :  { %2167 = vrcp.f32 %v1380_v23 }
 0xb22   :  { %v1508_v29 = vpop.xlane.xlu2 %1507 }
 0xb27   :  { %v2168_v25 = vpop.eup %2167 }
 0xb28   :  { %v1382_v27 = vmul.f32 %v2168_v25, %v2154_v0  ;;  %v1442_v28 = vpop.xlane.xlu0 %1441 }
 0xb29   :  { %2169 = vrcp.f32 %v1442_v28 }
 0xb2a   :  { %2023 = vmatmul.msk.f32.vlgmr.msrb.gmra.mxu3 %vm168_vm1, %v1382_v27  ;;  %2171 = vrcp.f32 %v1508_v29 }
 0xb2f   :  { %v2170_v58 = vpop.eup %2169  ;;  %v1573_v32 = vpop.xlane.xlu1 %1572 }
 0xb30   :  { %v1444_v30 = vmul.f32 %v2170_v58, %v2158_v6  ;;  %v2172_v33 = vpop.eup %2171  ;;  %2173 = vrcp.f32 %v1573_v32  ;;  %v2090_v32 = vld [vmem:[%s2896_s9 + $0x1] ss:$0 sm:$0xff] }
 0xb31   :  { %v1510_v34 = vmul.f32 %v2172_v33, %v2156_v2 }
 0xb36   :  { %v2174_v37 = vpop.eup %2173 }
 0xb37   :  { %v1575_v38 = vmul.f32 %v2174_v37, %v2160_v9 }
 0xb3b   :  { %v1447_v31 = vpop.permute.xlu0 %1446 }
 0xb3c   :  { %1467 = vmatpush.msrb.mxu1 %v1447_v31 }
 0xb3d   :  { %2026 = vmatmul.msk.f32.vlgmr.msrb.gmra.mxu1 %vm168_vm1, %v1444_v30 }
 0xb43   :  { %v1512_v35 = vpop.permute.xlu0 %1511 }
 0xb44   :  { %1532 = vmatpush.msra.mxu3 %v1512_v35  ;;  %v2091_v35 = vld [vmem:[%s2897_s10 + $0x1] ss:$0 sm:$0xff] }
 0xb45   :  { %2029 = vmatmul.msk.f32.vlgmr.msra.gmra.mxu3 %vm168_vm1, %v1510_v34 }
 0xb4b   :  { %v1577_v39 = vpop.permute.xlu0 %1576 }
 0xb4c   :  { %1597 = vmatpush.msra.mxu1 %v1577_v39 }
 0xb4d   :  { %2032 = vmatmul.msk.f32.vlgmr.msra.gmra.mxu1 %vm168_vm1, %v1575_v38 }
 0xb68   :  { %v1198_v26 = vpop.f32.mrf.mxu1 }
 0xb69   :  { %1332 = vrot.lane.b32.xlu2 %v1198_v26, %s2935_s6 }
 0xb74   :  { %v1328_v24 = vpop.f32.mrf.mxu1 }
 0xb75   :  { %1340 = vrot.lane.b32.xlu0 %v1328_v24, %s2936_s26 }
 0xb89   :  { %v1263_v41 = vpop.f32.mrf.mxu3 }
 0xb8a   :  { %1336 = vrot.lane.b32.xlu0 %v1263_v41, %s2937_s4 }
 0xbad   :  { %v1403_v43 = vpop.f32.mrf.mxu3 }
 0xbba   :  { %v1469_v4 = vpop.f32.mrf.mxu1 }
 0xbbb   :  { %1603 = vrot.lane.b32.xlu1 %v1469_v4, %s2935_s6 }
 0xbc3   :  { %v1333_v51 = vpop.permute.xlu2 %1332 }
 0xbc4   :  { %v1343_v52 = vsel %vm168_vm1, %v1132_v40, %v1333_v51  ;;  %v2055_v51 = vld [vmem:[%s2900_s13 + $0x70] sm:$0xff] }
 0xbc8   :  { %v1534_v7 = vpop.f32.mrf.mxu3 }
 0xbc9   :  { %1607 = vrot.lane.b32.xlu0 %v1534_v7, %s2937_s4 }
 0xbca   :  { %v1599_v48 = vpop.f32.mrf.mxu1 }
 0xbcb   :  { %1611 = vrot.lane.b32.xlu2 %v1599_v48, %s2936_s26 }
 0xbe7   :  { %v1341_v50 = vpop.permute.xlu0 %1340 }
 0xbfc   :  { %v1337_v54 = vpop.permute.xlu0 %1336 }
 0xbfd   :  { %v1344_v56 = vsel %vm438_vm2, %v1343_v52, %v1337_v54  ;;  %v2054_v52 = vld [vmem:[%s2900_s13 + $0x68] sm:$0xff]  ;;  %v2053_v54 = vld [vmem:[%s2900_s13 + $0x60] sm:$0xff] }
 0xbfe   :  { %v1345_v57 = vsel %vm440_vm3, %v1344_v56, %v1341_v50  ;;  %v2056_v50 = vld [vmem:[%s2900_s13 + $0x78] sm:$0xff] }
 0xbff   :  { %2038 = vmatmul.msk.f32.vlgmr.msrb.gmra.mxu2 %vm76_vm0, %v1345_v57  ;;  %1801 = vmatpush.msrb.mxu0 %v2056_v50  ;;  %v2052_v56 = vld [vmem:[%s2900_s13 + $0x58] sm:$0xff]  ;;  %v2051_v57 = vld [vmem:[%s2900_s13 + $0x50] sm:$0xff] }
 0xc01   :  { %1802 = vmatpush.msrb.mxu0 %v2055_v51 }
 0xc03   :  { %1803 = vmatpush.msrb.mxu0 %v2054_v52 }
 0xc05   :  { %1804 = vmatpush.msrb.mxu0 %v2053_v54 }
 0xc07   :  { %1805 = vmatpush.msrb.mxu0 %v2052_v56 }
 0xc09   :  { %1806 = vmatpush.msrb.mxu0 %v2051_v57 }
 0xc25   :  { %v1612_v62 = vpop.permute.xlu2 %1611 }
 0xc2d   :  { %v1604_v59 = vpop.permute.xlu1 %1603 }
 0xc2e   :  { %v1614_v60 = vsel %vm168_vm1, %v1403_v43, %v1604_v59  ;;  %v2050_v59 = vld [vmem:[%s2900_s13 + $0x48] sm:$0xff] }
 0xc2f   :  { %1807 = vmatpush.msrb.mxu0 %v2050_v59 }
 0xc3b   :  { %v1608_v61 = vpop.permute.xlu0 %1607 }
 0xc3c   :  { %v1615_v63 = vsel %vm438_vm2, %v1614_v60, %v1608_v61  ;;  %v2049_v60 = vld [vmem:[%s2900_s13 + $0x40] sm:$0xff] }
 0xc3d   :  { %v1616_v0 = vsel %vm440_vm3, %v1615_v63, %v1612_v62  ;;  %1808 = vmatpush.msrb.mxu0 %v2049_v60  ;;  %v2092_v61 = vld [vmem:[%s2899_s12 + $0x1] ss:$0 sm:$0xff] }
 0xc3e   :  { %2039 = vmatmul.msk.f32.gmra.mxu2 %vm76_vm0, %v1616_v0 }
 0xc82   :  { %v1650_v2 = vpop.f32.mrf.mxu2 }
 0xc83   :  { %v1651_v3 = vadd.f32 %v2089_v1, %v1650_v2 }
 0xc85   :  { %v1656_v55 = vadd.f32 %v1651_v3, %v2653_v36 }
 0xc87   :  { %v1662_v5 = vsel %vm76_vm0, %v1656_v55, 0.0 }
 0xc88   :  { %1663 = vadd.xlane.f32.xlu0 %v1662_v5 }
 0xcc1   :  { %v1653_v6 = vpop.f32.mrf.mxu2 }
 0xcc2   :  { %v1654_v8 = vadd.f32 %v2089_v1, %v1653_v6 }
 0xcc4   :  { %v1657_v9 = vadd.f32 %v1654_v8, %v2663_v46  ;;  %v2045_v46 = vld [vmem:[%s2898_s11 + $0x38] sm:$0xff] }
 0xcc5   :  { %1744 = vmatpush.msrb.mxu3 %v2045_v46  ;;  %v2093_v46 = vld [vmem:[%s2901_s14 + $0x1] ss:$0 sm:$0xff] }
 0xcc6   :  { %v1665_v10 = vsel %vm76_vm0, %v1657_v9, 0.0 }
 0xcc7   :  { %1666 = vadd.xlane.f32.xlu2 %v1665_v10  ;;  %1745 = vmatpush.msrb.mxu3 %v2044_v53 }
 0xcc9   :  { %1746 = vmatpush.msrb.mxu3 %v2043_v13 }
 0xccb   :  { %1747 = vmatpush.msrb.mxu3 %v2042_v21 }
 0xcfb   :  { %v1664_v11 = vpop.xlane.xlu0 %1663 }
 0xcfc   :  { %v1668_v12 = vmul.f32 %v1664_v11, %v2536_v42 }
 0xcfe   :  { %v1670_v14 = vsub.f32 %v1656_v55, %v1668_v12 }
 0xd00   :  { %v1672_v15 = vmul.f32 %v1670_v14, %v1670_v14 }
 0xd02   :  { %v1674_v16 = vsel %vm76_vm0, %v1672_v15, 0.0 }
 0xd03   :  { %1675 = vadd.xlane.f32.xlu1 %v1674_v16 }
 0xd3a   :  { %v1667_v17 = vpop.xlane.xlu2 %1666 }
 0xd3b   :  { %v1669_v36 = vmul.f32 %v1667_v17, %v2536_v42 }
 0xd3d   :  { %v1671_v18 = vsub.f32 %v1657_v9, %v1669_v36 }
 0xd3f   :  { %v1673_v19 = vmul.f32 %v1671_v18, %v1671_v18 }
 0xd41   :  { %v1677_v20 = vsel %vm76_vm0, %v1673_v19, 0.0 }
 0xd42   :  { %1678 = vadd.xlane.f32.xlu0 %v1677_v20 }
 0xd76   :  { %v1676_v22 = vpop.xlane.xlu1 %1675 }
 0xd77   :  { %v1680_v23 = vmul.f32 %v1676_v22, %v2536_v42 }
 0xd79   :  { %v1682_v25 = vadd.f32 1e-05, %v1680_v23 }
 0xd7b   :  { %2175 = vrsqrt.f32 %v1682_v25  ;;  %vm1690_vm2 = vweird.f32 %v1682_v25 }
 0xd81   :  { %v2176_v27 = vpop.eup %2175 }
 0xd82   :  { %v1685_v28 = vmul.f32 %v2176_v27, %v1682_v25  ;;  %vm1691_vm1 = vweird.f32 %v2176_v27 }
 0xd83   :  { %vm1692_vm3 = vmor %vm1690_vm2, %vm1691_vm1 }
 0xd84   :  { %v1686_v29 = vmul.f32 %v2176_v27, %v1685_v28 }
 0xd86   :  { %v1687_v58 = vmul.f32 0.5, %v1686_v29 }
 0xd88   :  { %v1688_v30 = vsub.f32 1.5, %v1687_v58 }
 0xd8a   :  { %v1689_v31 = vmul.f32 %v2176_v27, %v1688_v30 }
 0xd8c   :  { %v1693_v33 = vsel %vm1692_vm3, %v2176_v27, %v1689_v31 }
 0xd8d   :  { %v1704_v34 = vmul.f32 %v1693_v33, %v1670_v14 }
 0xd8f   :  { %v1709_v37 = vmul.f32 %v2090_v32, %v1704_v34 }
 0xd91   :  { %v2811_v38 = vadd.f32 %v2091_v35, %v1709_v37 }
 0xd93   :  { %2047 = vmatmul.msk.f32.vlgmr.msrb.gmra.mxu3 %vm76_vm0, %v2811_v38 }
 0xdb5   :  { %v1679_v39 = vpop.xlane.xlu0 %1678 }
 0xdb6   :  { %v1681_v26 = vmul.f32 %v1679_v39, %v2536_v42 }
 0xdb8   :  { %v1683_v24 = vadd.f32 1e-05, %v1681_v26 }
 0xdba   :  { %2177 = vrsqrt.f32 %v1683_v24  ;;  %vm1700_vm7 = vweird.f32 %v1683_v24 }
 0xdc0   :  { %v2178_v40 = vpop.eup %2177 }
 0xdc1   :  { %v1695_v41 = vmul.f32 %v2178_v40, %v1683_v24  ;;  %vm1701_vm6 = vweird.f32 %v2178_v40 }
 0xdc2   :  { %vm1702_vm8 = vmor %vm1700_vm7, %vm1701_vm6 }
 0xdc3   :  { %v1696_v4 = vmul.f32 %v2178_v40, %v1695_v41  ;;  %v1883_v41 = vld [vmem:[%s2904_s17 + $0x10] sm:$0xff] }
 0xdc5   :  { %v1697_v43 = vmul.f32 0.5, %v1696_v4 }
 0xdc7   :  { %v1698_v44 = vsub.f32 1.5, %v1697_v43  ;;  %v1882_v43 = vld [vmem:[%s2904_s17 + $0x8] sm:$0xff] }
 0xdc9   :  { %v1699_v45 = vmul.f32 %v2178_v40, %v1698_v44  ;;  %v1881_v44 = vld [vmem:[%s2904_s17] sm:$0xff] }
 0xdcb   :  { %v1703_v7 = vsel %vm1702_vm8, %v2178_v40, %v1699_v45  ;;  %v1884_v40 = vld [vmem:[%s2904_s17 + $0x18] sm:$0xff] }
 0xdcc   :  { %v1705_v47 = vmul.f32 %v1703_v7, %v1671_v18  ;;  %1904 = vmatpush.msrb.mxu1 %v1884_v40 }
 0xdce   :  { %v1710_v48 = vmul.f32 %v2090_v32, %v1705_v47  ;;  %1905 = vmatpush.msrb.mxu1 %v1883_v41 }
 0xdd0   :  { %v1715_v49 = vadd.f32 %v2091_v35, %v1710_v48  ;;  %1906 = vmatpush.msrb.mxu1 %v1882_v43 }
 0xdd2   :  { %2048 = vmatmul.msk.f32.gmra.mxu3 %vm76_vm0, %v1715_v49  ;;  %1907 = vmatpush.msrb.mxu1 %v1881_v44 }
 0xe16   :  { %v1749_v62 = vpop.f32.mrf.mxu3 }
 0xe17   :  { %v1750_v63 = vadd.f32 %v2092_v61, %v1749_v62 }
 0xe19   :  { %v1755_v0 = vmul.f32 %v1750_v63, %v1750_v63 }
 0xe1b   :  { %v1757_v1 = vmul.f32 %v1755_v0, %v1750_v63 }
 0xe1d   :  { %v1759_v2 = vmul.f32 0.044715, %v1757_v1 }
 0xe1f   :  { %v1761_v3 = vadd.f32 %v1759_v2, %v1750_v63 }
 0xe21   :  { %v1763_v55 = vmul.f32 0.7978846, %v1761_v3 }
 0xe23   :  { %2179 = vtanh.f32 %v1763_v55  ;;  %v2095_v55 = vld [vmem:[%s2903_s16 + $0x1] ss:$0 sm:$0xff]  ;;  %s2247_s16 = smov [#allocation4]  }
 0xe24   :  { %s1936_s25 = sshll.u32 %s2247_s16, 4  ;;  %s1937_s25 = int_to_ptr.vmem [resolvable:$true] %s1936_s25 }
 0xe29   :  { %v2180_v5 = vpop.eup %2179 }
 0xe2a   :  { %v1767_v6 = vadd.f32 1.0, %v2180_v5 }
 0xe2c   :  { %v1769_v8 = vmul.f32 0.5, %v1767_v6 }
 0xe2e   :  { %v1771_v9 = vmul.f32 %v1769_v8, %v1750_v63 }
 0xe30   :  { %2058 = vmatmul.msk.f32.vlgmr.msrb.gmra.mxu0 %vm882_vm11, %v1771_v9 }
 0xe55   :  { %v1752_v10 = vpop.f32.mrf.mxu3 }
 0xe56   :  { %v1753_v11 = vadd.f32 %v2092_v61, %v1752_v10  ;;  %v2096_v10 = vld [vmem:[%s2905_s18] ss:$0 sm:$0xff]  ;;  %s1938_s18 = sshll.u32 %s2907_s20, 4  ;;  %s1939_s18 = int_to_ptr.hbm [resolvable:$true] %s1938_s18 }
 0xe58   :  { %v1756_v12 = vmul.f32 %v1753_v11, %v1753_v11 }
 0xe5a   :  { %v1758_v14 = vmul.f32 %v1756_v12, %v1753_v11 }
 0xe5c   :  { %v1760_v15 = vmul.f32 0.044715, %v1758_v14 }
 0xe5e   :  { %v1762_v16 = vadd.f32 %v1760_v15, %v1753_v11 }
 0xe60   :  { %v1764_v17 = vmul.f32 0.7978846, %v1762_v16 }
 0xe62   :  { %2181 = vtanh.f32 %v1764_v17 }
 0xe68   :  { %v2182_v36 = vpop.eup %2181 }
 0xe69   :  { %v1768_v18 = vadd.f32 1.0, %v2182_v36 }
 0xe6b   :  { %v1770_v19 = vmul.f32 0.5, %v1768_v18 }
 0xe6d   :  { %v1772_v20 = vmul.f32 %v1770_v19, %v1753_v11 }
 0xe6f   :  { %2059 = vmatmul.msk.f32.gmra.mxu0 %vm882_vm11, %v1772_v20 }
 0xead   :  { %v1810_v53 = vpop.f32.mrf.mxu0 }
 0xeae   :  { %v1811_v13 = vadd.f32 %v2093_v46, %v1810_v53 }
 0xeb0   :  { %v1816_v21 = vadd.f32 %v1811_v13, %v2811_v38 }
 0xeb2   :  { %v1822_v22 = vsel %vm76_vm0, %v1816_v21, 0.0 }
 0xeb3   :  { %1823 = vadd.xlane.f32.xlu0 %v1822_v22 }
 0xeec   :  { %v1813_v23 = vpop.f32.mrf.mxu0 }
 0xeed   :  { %v1814_v25 = vadd.f32 %v2093_v46, %v1813_v23 }
 0xeef   :  { %v1817_v27 = vadd.f32 %v1814_v25, %v1715_v49 }
 0xef1   :  { %v1825_v28 = vsel %vm76_vm0, %v1817_v27, 0.0 }
 0xef2   :  { %1826 = vadd.xlane.f32.xlu2 %v1825_v28 }
 0xf26   :  { %v1824_v29 = vpop.xlane.xlu0 %1823 }
 0xf27   :  { %v1828_v58 = vmul.f32 %v1824_v29, %v2536_v42 }
 0xf29   :  { %v1830_v30 = vsub.f32 %v1816_v21, %v1828_v58 }
 0xf2b   :  { %v1832_v31 = vmul.f32 %v1830_v30, %v1830_v30 }
 0xf2d   :  { %v1834_v32 = vsel %vm76_vm0, %v1832_v31, 0.0 }
 0xf2e   :  { %1835 = vadd.xlane.f32.xlu2 %v1834_v32 }
 0xf65   :  { %v1827_v33 = vpop.xlane.xlu2 %1826 }
 0xf66   :  { %v1829_v34 = vmul.f32 %v1827_v33, %v2536_v42 }
 0xf68   :  { %v1831_v35 = vsub.f32 %v1817_v27, %v1829_v34 }
 0xf6a   :  { %v1833_v37 = vmul.f32 %v1831_v35, %v1831_v35 }
 0xf6c   :  { %v1837_v38 = vsel %vm76_vm0, %v1833_v37, 0.0 }
 0xf6d   :  { %1838 = vadd.xlane.f32.xlu1 %v1837_v38 }
 0xfa1   :  { %v1836_v39 = vpop.xlane.xlu2 %1835 }
 0xfa2   :  { %v1840_v26 = vmul.f32 %v1836_v39, %v2536_v42 }
 0xfa4   :  { %v1842_v24 = vadd.f32 1e-05, %v1840_v26 }
 0xfa6   :  { %2183 = vrsqrt.f32 %v1842_v24  ;;  %vm1850_vm10 = vweird.f32 %v1842_v24 }
 0xfac   :  { %v2184_v4 = vpop.eup %2183 }
 0xfad   :  { %v1845_v45 = vmul.f32 %v2184_v4, %v1842_v24  ;;  %vm1851_vm9 = vweird.f32 %v2184_v4 }
 0xfae   :  { %vm1852_vm11 = vmor %vm1850_vm10, %vm1851_vm9 }
 0xfaf   :  { %v1846_v48 = vmul.f32 %v2184_v4, %v1845_v45 }
 0xfb1   :  { %v1847_v50 = vmul.f32 0.5, %v1846_v48 }
 0xfb3   :  { %v1848_v51 = vsub.f32 1.5, %v1847_v50 }
 0xfb5   :  { %v1849_v56 = vmul.f32 %v2184_v4, %v1848_v51 }
 0xfb7   :  { %v1853_v60 = vsel %vm1852_vm11, %v2184_v4, %v1849_v56 }
 0xfb8   :  { %v1864_v63 = vmul.f32 %v1853_v60, %v1830_v30 }
 0xfe0   :  { %v1839_v7 = vpop.xlane.xlu1 %1838 }
 0xfe1   :  { %v1841_v47 = vmul.f32 %v1839_v7, %v2536_v42  ;;  %v2094_v42 = vld [vmem:[%s2902_s15 + $0x1] ss:$0 sm:$0xff]  ;;  %s2246_s15 = smov [#allocation2]  }
 0xfe2   :  { %v1869_v2 = vmul.f32 %v2094_v42, %v1864_v63  ;;  %s1925_s8 = sshll.u32 %s2246_s15, 4  ;;  %s1926_s8 = int_to_ptr.vmem [resolvable:$true] %s1925_s8 }
 0xfe3   :  { %v1843_v49 = vadd.f32 1e-05, %v1841_v47 }
 0xfe4   :  { %v1874_v6 = vadd.f32 %v2095_v55, %v1869_v2 }
 0xfe5   :  { %2185 = vrsqrt.f32 %v1843_v49  ;;  %vm1860_vm13 = vweird.f32 %v1843_v49 }
 0xfeb   :  { %v2186_v52 = vpop.eup %2185 }
 0xfec   :  { %v1855_v54 = vmul.f32 %v2186_v52, %v1843_v49  ;;  %vm1861_vm12 = vweird.f32 %v2186_v52 }
 0xfed   :  { %vm1862_vm14 = vmor %vm1860_vm13, %vm1861_vm12 }
 0xfee   :  { %v1856_v57 = vmul.f32 %v2186_v52, %v1855_v54 }
 0xff0   :  { %v1857_v59 = vmul.f32 0.5, %v1856_v57 }
 0xff2   :  { %v1858_v61 = vsub.f32 1.5, %v1857_v59 }
 0xff4   :  { %v1859_v62 = vmul.f32 %v2186_v52, %v1858_v61 }
 0xff6   :  { %v1863_v0 = vsel %vm1862_vm14, %v2186_v52, %v1859_v62 }
 0xff7   :  { %v1865_v1 = vmul.f32 %v1863_v0, %v1831_v35 }
 0xff9   :  { %v1870_v3 = vmul.f32 %v2094_v42, %v1865_v1 }
 0xffb   :  { %v1875_v5 = vadd.f32 %v2095_v55, %v1870_v3 }
 0xffd   :  { %v1877_v8 = vrot.slane %v1875_v5, 7 }
 0xfff   :  { %v1880_v9 = vsel %vm1879_vm15, %v1874_v6, %v1877_v8 }
0x1000   :  { %2062 = vmatmul.msk.f32.vlgmr.msrb.gmra.mxu1 %vm76_vm0, %v1880_v9  ;;  %vm1918_vm0 = vcmask 25600  }
0x107d   :  { %v1909_v11 = vpop.f32.mrf.mxu1 }
0x107e   :  { %v1910_v12 = vadd.f32 %v2096_v10, %v1909_v11 }
0x1080   :  { %1915 = vrot.lane.b32.xlu0 %v1910_v12, %s2933_s24  ;;  %1913 = vst.msk [vmem:[#allocation2] sm:$0x3] %vm1912_vm4, %v1910_v12 }
0x1081   :  { %1930 = dma.vmem_to_hbm [thread:$0]  %s1926_s8, 32, %s1928_s21, [#allocation3]  }
0x10f2   :  { %v1916_v14 = vpop.permute.xlu0 %1915 }
0x10f3   :  { %1919 = vst.msk [vmem:[#allocation4] sm:$0x3] %vm1918_vm0, %v1916_v14 }
0x10f4   :  { %1941 = dma.vmem_to_hbm [thread:$0]  %s1937_s25, 32, %s1939_s18, [#allocation5]  }
0x10f5   :  { %2235 = dma.done.wait [#allocation3], 32  }
0x10f6   :  { %2236 = vsyncadd [#allocation3], 4294967264 }
0x10f7   :  { %2237 = dma.done.wait [#allocation5], 32  }
0x10f8   :  { %2238 = vsyncadd [#allocation5], 4294967264 }
0x10f9   :  { %1950 = vsyncpa [#allocation3], 1 }
0x10fa   :  { %1951 = vsyncpa [#allocation5], 1 }

</bundles_post_ra>
